<compile_context>
chip_gen: v7x
topology: tpu7x:2x2x1
jax: 0.10.0
libtpu: 0.0.40
codegen_flags: <defaults>
</compile_context>

<pallas_src>
import numpy as np
import jax
import jax.numpy as jnp
from jax.experimental import pallas as pl
from jax.experimental.pallas import tpu as pltpu


NSPLIT = 4        # "parallel" grid steps: 2 per TensorCore on v7x (enables pipelining),
                  # 4 cheap sequential steps on v5e/v6e (smaller exposed DMA prologue).
MXU_LANES = 128   # packed lane width (G = MXU_LANES // n).  128 -> G=4: half the
                  # block-diagonal zero inflation vs 256; MXU is weight-load bound at
                  # M=B=8 so the narrower tile costs ~nothing (and is v5e-native).


# ----------------------------------------------------------------------------------
# Pallas kernel: one grid step processes C/NSPLIT chunks of G block-diagonally packed
# splines, all resident in VMEM, and writes one lane-dense (B, Gn) partial accumulator.
# ----------------------------------------------------------------------------------
def _packed_spline_kernel(xr_ref, w0_ref, b0_ref, wh_ref, bh_ref, w2_ref, out_ref):
    # xr_ref : (Cp, ni, B, Gn)  f32   inputs, each replicated across its spline's n lanes
    # w0_ref : (Cp, ni, 1, Gn)  f32   first-layer weight rows (one lane row per input)
    # b0_ref : (Cp, 1, Gn)      f32
    # wh_ref : (Cp, nh, Gn, Gn) bf16  block-diagonal hidden-layer weights
    # bh_ref : (Cp, nh, 1, Gn)  f32
    # w2_ref : (Cp, 1, Gn)      f32   Linear(n, 1) weights packed as a lane row
    # out_ref: (1, B, Gn)       f32   lane-dense partial accumulator
    Cp = xr_ref.shape[0]
    ni = xr_ref.shape[1]
    nh = wh_ref.shape[1]
    B = xr_ref.shape[2]
    Gn = wh_ref.shape[2]

    acc = jnp.zeros((B, Gn), jnp.float32)
    # Static unroll: Cp=8 iterations, each touching ~1 vreg of live state (8x128 f32),
    # so no spill pressure; lax.fori_loop live-range bounding is not needed here.
    for c in range(Cp):
        # First layer on the VPU: no MXU weight-tile load, no K = G*ni zero padding.
        pre = b0_ref[c]                                    # (1, Gn)
        for i in range(ni):
            pre = pre + xr_ref[c, i] * w0_ref[c, i]        # (B, Gn) lane-dense FMA
        h = jnp.tanh(pre)
        # Hidden layers on the MXU: bf16 LHS / bf16 weights, f32 accumulation.
        for l in range(nh):
            h = jnp.tanh(
                jnp.dot(h.astype(jnp.bfloat16), wh_ref[c, l],
                        preferred_element_type=jnp.float32) + bh_ref[c, l])
        # Fold each spline's Linear(n, 1) into a lane-dense FMA.
        acc = acc + h * w2_ref[c]
    # Lane-dense store; cross-lane and cross-step reductions happen in the wrapper.
    out_ref[0] = acc


def run_packed_splines(x_rep, w0r, b0c, Wh_bd, bhc, w2r):
    """Returns (NSPLIT, B, Gn) f32 partial accumulators; reduce + add b2_sum outside."""
    C, ni, B, Gn = x_rep.shape
    nh = Wh_bd.shape[1]
    assert C % NSPLIT == 0
    Cp = C // NSPLIT
    part = pl.pallas_call(
        _packed_spline_kernel,
        out_shape=jax.ShapeDtypeStruct((NSPLIT, B, Gn), jnp.float32),
        grid=(NSPLIT,),
        in_specs=[
            pl.BlockSpec((Cp, ni, B, Gn), lambda p: (p, 0, 0, 0)),
            pl.BlockSpec((Cp, ni, 1, Gn), lambda p: (p, 0, 0, 0)),
            pl.BlockSpec((Cp, 1, Gn), lambda p: (p, 0, 0)),
            pl.BlockSpec((Cp, nh, Gn, Gn), lambda p: (p, 0, 0, 0)),
            pl.BlockSpec((Cp, nh, 1, Gn), lambda p: (p, 0, 0, 0)),
            pl.BlockSpec((Cp, 1, Gn), lambda p: (p, 0, 0)),
        ],
        out_specs=pl.BlockSpec((1, B, Gn), lambda p: (p, 0, 0)),
        compiler_params=pltpu.CompilerParams(dimension_semantics=("parallel",)),
    )(x_rep, w0r, b0c, Wh_bd, bhc, w2r)
    return part


# ----------------------------------------------------------------------------------
# One-time parameter packing: fuse both families, pad, build lane-dense tiles.
# ----------------------------------------------------------------------------------
def pack_model_params(fam3_params, fam2_params, G, nsplit=NSPLIT):
    w0t3, b03, wht3, bh3, w2t3, b23 = fam3_params
    w0t2, b02, wht2, bh2, w2t2, b22 = fam2_params
    S3, ni, n = w0t3.shape
    S2, ni2, _ = w0t2.shape
    nh = wht3.shape[1]

    # pad the 2-input family up to ni inputs with zero weight rows (inputs padded too)
    w0t2 = jnp.pad(w0t2, ((0, 0), (0, ni - ni2), (0, 0)))
    w0t = jnp.concatenate([w0t3, w0t2], axis=0)         # (S, ni, n)
    b0 = jnp.concatenate([b03, b02], axis=0)            # (S, 1, n)
    wht = jnp.concatenate([wht3, wht2], axis=0)         # (S, nh, n, n)
    bh = jnp.concatenate([bh3, bh2], axis=0)            # (S, nh, 1, n)
    w2t = jnp.concatenate([w2t3, w2t2], axis=0)         # (S, n, 1)
    b2 = jnp.concatenate([b23, b22], axis=0)            # (S, 1, 1)

    S = S3 + S2
    S_pad = int(np.ceil(S / (G * nsplit)) * (G * nsplit))
    pad = S_pad - S
    # zero-parameter dummy splines contribute exactly 0
    w0t = jnp.pad(w0t, ((0, pad), (0, 0), (0, 0)))
    b0 = jnp.pad(b0, ((0, pad), (0, 0), (0, 0)))
    wht = jnp.pad(wht, ((0, pad), (0, 0), (0, 0), (0, 0)))
    bh = jnp.pad(bh, ((0, pad), (0, 0), (0, 0), (0, 0)))
    w2t = jnp.pad(w2t, ((0, pad), (0, 0), (0, 0)))

    C = S_pad // G
    eye = jnp.eye(G, dtype=jnp.float32)

    # first layer as lane rows (VPU path): w0r[c, i, 0, g*n+k] = W0t[cG+g, i, k]
    w0r = w0t.reshape(C, G, ni, n).transpose(0, 2, 1, 3).reshape(C, ni, 1, G * n)
    b0c = b0.reshape(C, G, n).reshape(C, 1, G * n)

    # block-diagonal hidden layers (bf16, the dominant HBM stream):
    #   Wh_bd[c, l, g*n+k, h*n+m] = Wh[cG+g, l, k, m] * delta(g, h)
    Wh_bd = jnp.einsum('cglkm,gh->clgkhm', wht.reshape(C, G, nh, n, n),
                       eye).reshape(C, nh, G * n, G * n).astype(jnp.bfloat16)
    bhc = bh.reshape(C, G, nh, n).transpose(0, 2, 1, 3).reshape(C, nh, 1, G * n)

    # output layer packed as a lane row: w2r[c, 0, g*n+k] = w2[cG+g, k]
    w2r = w2t.reshape(C, G, n).reshape(C, 1, G * n)
    b2_sum = jnp.sum(b2)

    meta = dict(S=S, S_pad=S_pad, C=C, G=G, ni=ni, ni2=ni2, n=n, nh=nh)
    return (w0r, b0c, Wh_bd, bhc, w2r, b2_sum), meta


# ----------------------------------------------------------------------------------
# Forward glue (plain JAX, jitted): z-score normalization, feature gathers, x packing.
# ----------------------------------------------------------------------------------
def model3bd_forward(F_dist, F_cos, F_sin, F_angle,
                     Zscore_dist, Zscore_cos, Zscore_sin,
                     idx3, idx5, packed_params, meta):
    del F_angle  # unused in the reference forward as well
    sel = jnp.arange(45)
    FNorm_dist = (F_dist[:, sel] - Zscore_dist[0, sel]) / Zscore_dist[1, sel]
    FNorm_cos = (F_cos - Zscore_cos[0, :]) / Zscore_cos[1, :]
    FNorm_sin = (F_sin - Zscore_sin[0, :]) / Zscore_sin[1, :]

    B = F_dist.shape[0]
    C, G, ni, ni2, n = meta['C'], meta['G'], meta['ni'], meta['ni2'], meta['n']
    S, S_pad = meta['S'], meta['S_pad']

    # (120, B, 3) gathered distance triplets
    X3 = jnp.transpose(FNorm_dist[:, idx3], (1, 0, 2))
    # (7, B, 2) [cos, sin] pairs, zero-padded to 3 inputs
    X2 = jnp.transpose(jnp.stack([FNorm_cos[:, idx5], FNorm_sin[:, idx5]], axis=-1), (1, 0, 2))
    X2 = jnp.pad(X2, ((0, 0), (0, 0), (0, ni - ni2)))

    X = jnp.concatenate([X3, X2], axis=0)                       # (127, B, 3)
    X = jnp.pad(X, ((0, S_pad - S), (0, 0), (0, 0)))            # (S_pad, B, 3)
    # lane-replicated inputs: x_rep[c, i, b, g*n+k] = X[c*G+g, b, i]  (for all k)
    X_t = X.reshape(C, G, B, ni).transpose(0, 3, 2, 1)          # (C, ni, B, G)
    x_rep = jnp.broadcast_to(X_t[..., None], (C, ni, B, G, n)).reshape(C, ni, B, G * n)

    w0r, b0c, Wh_bd, bhc, w2r, b2_sum = packed_params
    part = run_packed_splines(x_rep, w0r, b0c, Wh_bd, bhc, w2r)  # (NSPLIT, B, Gn)
    out = jnp.sum(jnp.sum(part, axis=0), axis=1, keepdims=True) + b2_sum  # (B, 1)
    # torch:  U = sum(out)  -> sums the (B,1) rows, giving a shape-(1,) tensor
    return jnp.sum(out, axis=0)


# ----------------------------------------------------------------------------------
# Deterministic parameter construction (PyTorch Linear-style uniform init).
# ----------------------------------------------------------------------------------
def init_family(key, S, ni, n, nl):
    assert nl >= 2, "kernel assumes at least one hidden Linear(n, n)"
    ks = jax.random.split(key, 6)

    def unif(k, shape, fan_in):
        bound = 1.0 / np.sqrt(fan_in)
        return jax.random.uniform(k, shape, jnp.float32, -bound, bound)

    nh = nl - 1
    w0t = unif(ks[0], (S, ni, n), ni)       # transposed Linear(ni, n) weights
    b0 = unif(ks[1], (S, 1, n), ni)
    wht = unif(ks[2], (S, nh, n, n), n)     # transposed hidden Linear(n, n) weights
    bh = unif(ks[3], (S, nh, 1, n), n)
    w2t = unif(ks[4], (S, n, 1), n)         # transposed Linear(n, 1) weights
    b2 = unif(ks[5], (S, 1, 1), n)
    return w0t, b0, wht, bh, w2t, b2


def ref_family_f32(x, w0t, b0, wht, bh, w2t, b2):
    """Pure f32 ('highest' precision) reference."""
    hp = 'highest'
    h = jnp.tanh(jnp.einsum('sbi,sin->sbn', x, w0t, precision=hp) + b0)
    for l in range(wht.shape[1]):
        h = jnp.tanh(jnp.einsum('sbn,snm->sbm', h, wht[:, l], precision=hp) + bh[:, l])
    y = jnp.einsum('sbn,sno->sbo', h, w2t, precision=hp) + b2
    return jnp.sum(y, axis=0)


def ref_family_mixed(x, w0t, b0, wht, bh, w2t, b2):
    """Reference with the same precision recipe as the kernel (bf16 hidden weights/LHS,
    f32 accumulation) -- validates the packing / kernel logic tightly."""
    hp = 'highest'
    h = jnp.tanh(jnp.einsum('sbi,sin->sbn', x, w0t, precision=hp) + b0)
    for l in range(wht.shape[1]):
        h = jnp.tanh(jnp.einsum('sbn,snm->sbm',
                                h.astype(jnp.bfloat16),
                                wht[:, l].astype(jnp.bfloat16),
                                preferred_element_type=jnp.float32) + bh[:, l])
    y = jnp.einsum('sbn,sno->sbo', h, w2t, precision=hp) + b2
    return jnp.sum(y, axis=0)


if __name__ == "__main__":
    key = jax.random.PRNGKey(0)
    B, n, nl = 8, 32, 2
    N_DIST, N_ANG = 45, 7
    ks = jax.random.split(key, 12)

    # Inputs (deterministic)
    F_dist = jax.random.uniform(ks[0], (B, N_DIST), jnp.float32, 2.0, 6.0)
    F_cos = jax.random.uniform(ks[1], (B, N_ANG), jnp.float32, -1.0, 1.0)
    F_sin = jax.random.uniform(ks[2], (B, N_ANG), jnp.float32, -1.0, 1.0)
    F_angle = jax.random.uniform(ks[3], (B, N_ANG), jnp.float32)  # unused by forward

    # Z-score constants: row 0 = mean, row 1 = std (>0)
    Zscore_dist = jnp.stack([jax.random.uniform(ks[4], (N_DIST,), jnp.float32, 3.0, 4.0),
                             jax.random.uniform(ks[5], (N_DIST,), jnp.float32, 0.5, 1.5)])
    Zscore_cos = jnp.stack([jax.random.uniform(ks[6], (N_ANG,), jnp.float32, -0.2, 0.2),
                            jax.random.uniform(ks[7], (N_ANG,), jnp.float32, 0.5, 1.0)])
    Zscore_sin = jnp.stack([jax.random.uniform(ks[8], (N_ANG,), jnp.float32, -0.2, 0.2),
                            jax.random.uniform(ks[9], (N_ANG,), jnp.float32, 0.5, 1.0)])

    # Deterministic index tables (reference defines them as placeholder zeros; any valid
    # integer indices preserve the forward semantics — chosen deterministically here)
    idx3 = jnp.asarray(np.stack([np.arange(120) % 45,
                                 (np.arange(120) + 1) % 45,
                                 (np.arange(120) + 2) % 45], axis=1), dtype=jnp.int32)
    idx5 = jnp.asarray(np.arange(7) % 7, dtype=jnp.int32)

    fam3_params = init_family(ks[10], 120, 3, n, nl)
    fam2_params = init_family(ks[11], 7, 2, n, nl)

    # Pack parameters once (lane-dense tiles, bf16 hidden weights)
    G = max(1, MXU_LANES // n)               # 4 splines per 128-lane tile
    packed, meta = pack_model_params(fam3_params, fam2_params, G)

    @jax.jit
    def fwd(fd, fc, fs, fa):
        return model3bd_forward(fd, fc, fs, fa,
                                Zscore_dist, Zscore_cos, Zscore_sin,
                                idx3, idx5, packed, meta)

    U = fwd(F_dist, F_cos, F_sin, F_angle)
    jax.block_until_ready(U)
    assert U.shape == (1,)

    # Pure-JAX references
    sel = jnp.arange(45)
    FNd = (F_dist[:, sel] - Zscore_dist[0, sel]) / Zscore_dist[1, sel]
    FNc = (F_cos - Zscore_cos[0, :]) / Zscore_cos[1, :]
    FNs = (F_sin - Zscore_sin[0, :]) / Zscore_sin[1, :]
    X3 = jnp.transpose(FNd[:, idx3], (1, 0, 2))
    X2 = jnp.transpose(jnp.stack([FNc[:, idx5], FNs[:, idx5]], axis=-1), (1, 0, 2))

    # 1) Logic check vs a reference using the SAME precision recipe (tight).
    U_mixed = jnp.sum(ref_family_mixed(X3, *fam3_params)
                      + ref_family_mixed(X2, *fam2_params), axis=0)
    if not jnp.allclose(U, U_mixed, rtol=1e-3, atol=5e-3):
        raise AssertionError(f"logic mismatch: pallas={U} mixed_ref={U_mixed}")

    # 2) Precision-drift check vs the full-f32 reference (looser: bf16 hidden weights).
    U_f32 = jnp.sum(ref_family_f32(X3, *fam3_params)
                    + ref_family_f32(X2, *fam2_params), axis=0)
    if not jnp.allclose(U, U_f32, rtol=2e-2, atol=1e-1):
        raise AssertionError(f"precision drift too large: pallas={U} f32_ref={U_f32}")

    print("KERNEL_OK")
</pallas_src>

<mosaic_0001>
module attributes {stable_mosaic.version = 11 : i64} {
  func.func @_packed_spline_kernel(%arg0: i32, %arg1: memref<8x3x8x128xf32, #tpu.memory_space<vmem>>, %arg2: memref<8x3x1x128xf32, #tpu.memory_space<vmem>>, %arg3: memref<8x1x128xf32, #tpu.memory_space<vmem>>, %arg4: memref<8x1x128x128xbf16, #tpu.memory_space<vmem>>, %arg5: memref<8x1x1x128xf32, #tpu.memory_space<vmem>>, %arg6: memref<8x1x128xf32, #tpu.memory_space<vmem>>, %arg7: memref<1x8x128xf32, #tpu.memory_space<vmem>>) attributes {dimension_semantics = [#tpu.dimension_semantics<parallel>], iteration_bounds = array<i64: 4>, scalar_prefetch = 0 : i64, scratch_operands = 0 : i64, tpu.core_type = #tpu.core_type<tc>, window_params = [{transform_indices = @transform_0, window_bounds = array<i64: 8, 3, 8, 128>}, {transform_indices = @transform_1, window_bounds = array<i64: 8, 3, 1, 128>}, {transform_indices = @transform_2, window_bounds = array<i64: 8, 1, 128>}, {transform_indices = @transform_3, window_bounds = array<i64: 8, 1, 128, 128>}, {transform_indices = @transform_4, window_bounds = array<i64: 8, 1, 1, 128>}, {transform_indices = @transform_5, window_bounds = array<i64: 8, 1, 128>}, {transform_indices = @transform_6, window_bounds = array<i64: 1, 8, 128>}]} {
    %cst = arith.constant 0.000000e+00 : f32
    %0 = vector.broadcast %cst : f32 to vector<8x128xf32>
    %c0 = arith.constant 0 : index
    %c0_0 = arith.constant 0 : index
    %c0_1 = arith.constant 0 : index
    %1 = vector.load %arg3[%c0, %c0_0, %c0_1] : memref<8x1x128xf32, #tpu.memory_space<vmem>>, vector<1x1x128xf32>
    %2 = vector.shape_cast %1 : vector<1x1x128xf32> to vector<1x128xf32>
    %c0_2 = arith.constant 0 : index
    %c0_3 = arith.constant 0 : index
    %c0_4 = arith.constant 0 : index
    %c0_5 = arith.constant 0 : index
    %3 = vector.load %arg1[%c0_2, %c0_3, %c0_4, %c0_5] : memref<8x3x8x128xf32, #tpu.memory_space<vmem>>, vector<1x1x8x128xf32>
    %4 = vector.shape_cast %3 : vector<1x1x8x128xf32> to vector<8x128xf32>
    %c0_6 = arith.constant 0 : index
    %c0_7 = arith.constant 0 : index
    %c0_8 = arith.constant 0 : index
    %c0_9 = arith.constant 0 : index
    %5 = vector.load %arg2[%c0_6, %c0_7, %c0_8, %c0_9] : memref<8x3x1x128xf32, #tpu.memory_space<vmem>>, vector<1x1x1x128xf32>
    %6 = vector.shape_cast %5 : vector<1x1x1x128xf32> to vector<1x128xf32>
    %7 = vector.broadcast %6 : vector<1x128xf32> to vector<8x128xf32>
    %8 = arith.mulf %4, %7 : vector<8x128xf32>
    %9 = vector.broadcast %2 : vector<1x128xf32> to vector<8x128xf32>
    %10 = arith.addf %9, %8 : vector<8x128xf32>
    %c0_10 = arith.constant 0 : index
    %c1 = arith.constant 1 : index
    %c0_11 = arith.constant 0 : index
    %c0_12 = arith.constant 0 : index
    %11 = vector.load %arg1[%c0_10, %c1, %c0_11, %c0_12] : memref<8x3x8x128xf32, #tpu.memory_space<vmem>>, vector<1x1x8x128xf32>
    %12 = vector.shape_cast %11 : vector<1x1x8x128xf32> to vector<8x128xf32>
    %c0_13 = arith.constant 0 : index
    %c1_14 = arith.constant 1 : index
    %c0_15 = arith.constant 0 : index
    %c0_16 = arith.constant 0 : index
    %13 = vector.load %arg2[%c0_13, %c1_14, %c0_15, %c0_16] : memref<8x3x1x128xf32, #tpu.memory_space<vmem>>, vector<1x1x1x128xf32>
    %14 = vector.shape_cast %13 : vector<1x1x1x128xf32> to vector<1x128xf32>
    %15 = vector.broadcast %14 : vector<1x128xf32> to vector<8x128xf32>
    %16 = arith.mulf %12, %15 : vector<8x128xf32>
    %17 = arith.addf %10, %16 : vector<8x128xf32>
    %c0_17 = arith.constant 0 : index
    %c2 = arith.constant 2 : index
    %c0_18 = arith.constant 0 : index
    %c0_19 = arith.constant 0 : index
    %18 = vector.load %arg1[%c0_17, %c2, %c0_18, %c0_19] : memref<8x3x8x128xf32, #tpu.memory_space<vmem>>, vector<1x1x8x128xf32>
    %19 = vector.shape_cast %18 : vector<1x1x8x128xf32> to vector<8x128xf32>
    %c0_20 = arith.constant 0 : index
    %c2_21 = arith.constant 2 : index
    %c0_22 = arith.constant 0 : index
    %c0_23 = arith.constant 0 : index
    %20 = vector.load %arg2[%c0_20, %c2_21, %c0_22, %c0_23] : memref<8x3x1x128xf32, #tpu.memory_space<vmem>>, vector<1x1x1x128xf32>
    %21 = vector.shape_cast %20 : vector<1x1x1x128xf32> to vector<1x128xf32>
    %22 = vector.broadcast %21 : vector<1x128xf32> to vector<8x128xf32>
    %23 = arith.mulf %19, %22 : vector<8x128xf32>
    %24 = arith.addf %17, %23 : vector<8x128xf32>
    %25 = math.tanh %24 : vector<8x128xf32>
    %26 = arith.truncf %25 : vector<8x128xf32> to vector<8x128xbf16>
    %c0_24 = arith.constant 0 : index
    %c0_25 = arith.constant 0 : index
    %c0_26 = arith.constant 0 : index
    %c0_27 = arith.constant 0 : index
    %27 = vector.load %arg4[%c0_24, %c0_25, %c0_26, %c0_27] : memref<8x1x128x128xbf16, #tpu.memory_space<vmem>>, vector<1x1x128x128xbf16>
    %28 = vector.shape_cast %27 : vector<1x1x128x128xbf16> to vector<128x128xbf16>
    %cst_28 = arith.constant dense<0.000000e+00> : vector<8x128xf32>
    %29 = tpu.matmul %26, %28, %cst_28 {dimension_numbers = #tpu.dot_dimension_numbers<[1], [0], [0], [1], [0, 0, 1, 1], [], []>} : vector<8x128xbf16>, vector<128x128xbf16>, vector<8x128xf32> -> vector<8x128xf32>
    %c0_29 = arith.constant 0 : index
    %c0_30 = arith.constant 0 : index
    %c0_31 = arith.constant 0 : index
    %c0_32 = arith.constant 0 : index
    %30 = vector.load %arg5[%c0_29, %c0_30, %c0_31, %c0_32] : memref<8x1x1x128xf32, #tpu.memory_space<vmem>>, vector<1x1x1x128xf32>
    %31 = vector.shape_cast %30 : vector<1x1x1x128xf32> to vector<1x128xf32>
    %32 = vector.broadcast %31 : vector<1x128xf32> to vector<8x128xf32>
    %33 = arith.addf %29, %32 : vector<8x128xf32>
    %34 = math.tanh %33 : vector<8x128xf32>
    %c0_33 = arith.constant 0 : index
    %c0_34 = arith.constant 0 : index
    %c0_35 = arith.constant 0 : index
    %35 = vector.load %arg6[%c0_33, %c0_34, %c0_35] : memref<8x1x128xf32, #tpu.memory_space<vmem>>, vector<1x1x128xf32>
    %36 = vector.shape_cast %35 : vector<1x1x128xf32> to vector<1x128xf32>
    %37 = vector.broadcast %36 : vector<1x128xf32> to vector<8x128xf32>
    %38 = arith.mulf %34, %37 : vector<8x128xf32>
    %39 = arith.addf %0, %38 : vector<8x128xf32>
    %c1_36 = arith.constant 1 : index
    %c0_37 = arith.constant 0 : index
    %c0_38 = arith.constant 0 : index
    %40 = vector.load %arg3[%c1_36, %c0_37, %c0_38] : memref<8x1x128xf32, #tpu.memory_space<vmem>>, vector<1x1x128xf32>
    %41 = vector.shape_cast %40 : vector<1x1x128xf32> to vector<1x128xf32>
    %c1_39 = arith.constant 1 : index
    %c0_40 = arith.constant 0 : index
    %c0_41 = arith.constant 0 : index
    %c0_42 = arith.constant 0 : index
    %42 = vector.load %arg1[%c1_39, %c0_40, %c0_41, %c0_42] : memref<8x3x8x128xf32, #tpu.memory_space<vmem>>, vector<1x1x8x128xf32>
    %43 = vector.shape_cast %42 : vector<1x1x8x128xf32> to vector<8x128xf32>
    %c1_43 = arith.constant 1 : index
    %c0_44 = arith.constant 0 : index
    %c0_45 = arith.constant 0 : index
    %c0_46 = arith.constant 0 : index
    %44 = vector.load %arg2[%c1_43, %c0_44, %c0_45, %c0_46] : memref<8x3x1x128xf32, #tpu.memory_space<vmem>>, vector<1x1x1x128xf32>
    %45 = vector.shape_cast %44 : vector<1x1x1x128xf32> to vector<1x128xf32>
    %46 = vector.broadcast %45 : vector<1x128xf32> to vector<8x128xf32>
    %47 = arith.mulf %43, %46 : vector<8x128xf32>
    %48 = vector.broadcast %41 : vector<1x128xf32> to vector<8x128xf32>
    %49 = arith.addf %48, %47 : vector<8x128xf32>
    %c1_47 = arith.constant 1 : index
    %c1_48 = arith.constant 1 : index
    %c0_49 = arith.constant 0 : index
    %c0_50 = arith.constant 0 : index
    %50 = vector.load %arg1[%c1_47, %c1_48, %c0_49, %c0_50] : memref<8x3x8x128xf32, #tpu.memory_space<vmem>>, vector<1x1x8x128xf32>
    %51 = vector.shape_cast %50 : vector<1x1x8x128xf32> to vector<8x128xf32>
    %c1_51 = arith.constant 1 : index
    %c1_52 = arith.constant 1 : index
    %c0_53 = arith.constant 0 : index
    %c0_54 = arith.constant 0 : index
    %52 = vector.load %arg2[%c1_51, %c1_52, %c0_53, %c0_54] : memref<8x3x1x128xf32, #tpu.memory_space<vmem>>, vector<1x1x1x128xf32>
    %53 = vector.shape_cast %52 : vector<1x1x1x128xf32> to vector<1x128xf32>
    %54 = vector.broadcast %53 : vector<1x128xf32> to vector<8x128xf32>
    %55 = arith.mulf %51, %54 : vector<8x128xf32>
    %56 = arith.addf %49, %55 : vector<8x128xf32>
    %c1_55 = arith.constant 1 : index
    %c2_56 = arith.constant 2 : index
    %c0_57 = arith.constant 0 : index
    %c0_58 = arith.constant 0 : index
    %57 = vector.load %arg1[%c1_55, %c2_56, %c0_57, %c0_58] : memref<8x3x8x128xf32, #tpu.memory_space<vmem>>, vector<1x1x8x128xf32>
    %58 = vector.shape_cast %57 : vector<1x1x8x128xf32> to vector<8x128xf32>
    %c1_59 = arith.constant 1 : index
    %c2_60 = arith.constant 2 : index
    %c0_61 = arith.constant 0 : index
    %c0_62 = arith.constant 0 : index
    %59 = vector.load %arg2[%c1_59, %c2_60, %c0_61, %c0_62] : memref<8x3x1x128xf32, #tpu.memory_space<vmem>>, vector<1x1x1x128xf32>
    %60 = vector.shape_cast %59 : vector<1x1x1x128xf32> to vector<1x128xf32>
    %61 = vector.broadcast %60 : vector<1x128xf32> to vector<8x128xf32>
    %62 = arith.mulf %58, %61 : vector<8x128xf32>
    %63 = arith.addf %56, %62 : vector<8x128xf32>
    %64 = math.tanh %63 : vector<8x128xf32>
    %65 = arith.truncf %64 : vector<8x128xf32> to vector<8x128xbf16>
    %c1_63 = arith.constant 1 : index
    %c0_64 = arith.constant 0 : index
    %c0_65 = arith.constant 0 : index
    %c0_66 = arith.constant 0 : index
    %66 = vector.load %arg4[%c1_63, %c0_64, %c0_65, %c0_66] : memref<8x1x128x128xbf16, #tpu.memory_space<vmem>>, vector<1x1x128x128xbf16>
    %67 = vector.shape_cast %66 : vector<1x1x128x128xbf16> to vector<128x128xbf16>
    %cst_67 = arith.constant dense<0.000000e+00> : vector<8x128xf32>
    %68 = tpu.matmul %65, %67, %cst_67 {dimension_numbers = #tpu.dot_dimension_numbers<[1], [0], [0], [1], [0, 0, 1, 1], [], []>} : vector<8x128xbf16>, vector<128x128xbf16>, vector<8x128xf32> -> vector<8x128xf32>
    %c1_68 = arith.constant 1 : index
    %c0_69 = arith.constant 0 : index
    %c0_70 = arith.constant 0 : index
    %c0_71 = arith.constant 0 : index
    %69 = vector.load %arg5[%c1_68, %c0_69, %c0_70, %c0_71] : memref<8x1x1x128xf32, #tpu.memory_space<vmem>>, vector<1x1x1x128xf32>
    %70 = vector.shape_cast %69 : vector<1x1x1x128xf32> to vector<1x128xf32>
    %71 = vector.broadcast %70 : vector<1x128xf32> to vector<8x128xf32>
    %72 = arith.addf %68, %71 : vector<8x128xf32>
    %73 = math.tanh %72 : vector<8x128xf32>
    %c1_72 = arith.constant 1 : index
    %c0_73 = arith.constant 0 : index
    %c0_74 = arith.constant 0 : index
    %74 = vector.load %arg6[%c1_72, %c0_73, %c0_74] : memref<8x1x128xf32, #tpu.memory_space<vmem>>, vector<1x1x128xf32>
    %75 = vector.shape_cast %74 : vector<1x1x128xf32> to vector<1x128xf32>
    %76 = vector.broadcast %75 : vector<1x128xf32> to vector<8x128xf32>
    %77 = arith.mulf %73, %76 : vector<8x128xf32>
    %78 = arith.addf %39, %77 : vector<8x128xf32>
    %c2_75 = arith.constant 2 : index
    %c0_76 = arith.constant 0 : index
    %c0_77 = arith.constant 0 : index
    %79 = vector.load %arg3[%c2_75, %c0_76, %c0_77] : memref<8x1x128xf32, #tpu.memory_space<vmem>>, vector<1x1x128xf32>
    %80 = vector.shape_cast %79 : vector<1x1x128xf32> to vector<1x128xf32>
    %c2_78 = arith.constant 2 : index
    %c0_79 = arith.constant 0 : index
    %c0_80 = arith.constant 0 : index
    %c0_81 = arith.constant 0 : index
    %81 = vector.load %arg1[%c2_78, %c0_79, %c0_80, %c0_81] : memref<8x3x8x128xf32, #tpu.memory_space<vmem>>, vector<1x1x8x128xf32>
    %82 = vector.shape_cast %81 : vector<1x1x8x128xf32> to vector<8x128xf32>
    %c2_82 = arith.constant 2 : index
    %c0_83 = arith.constant 0 : index
    %c0_84 = arith.constant 0 : index
    %c0_85 = arith.constant 0 : index
    %83 = vector.load %arg2[%c2_82, %c0_83, %c0_84, %c0_85] : memref<8x3x1x128xf32, #tpu.memory_space<vmem>>, vector<1x1x1x128xf32>
    %84 = vector.shape_cast %83 : vector<1x1x1x128xf32> to vector<1x128xf32>
    %85 = vector.broadcast %84 : vector<1x128xf32> to vector<8x128xf32>
    %86 = arith.mulf %82, %85 : vector<8x128xf32>
    %87 = vector.broadcast %80 : vector<1x128xf32> to vector<8x128xf32>
    %88 = arith.addf %87, %86 : vector<8x128xf32>
    %c2_86 = arith.constant 2 : index
    %c1_87 = arith.constant 1 : index
    %c0_88 = arith.constant 0 : index
    %c0_89 = arith.constant 0 : index
    %89 = vector.load %arg1[%c2_86, %c1_87, %c0_88, %c0_89] : memref<8x3x8x128xf32, #tpu.memory_space<vmem>>, vector<1x1x8x128xf32>
    %90 = vector.shape_cast %89 : vector<1x1x8x128xf32> to vector<8x128xf32>
    %c2_90 = arith.constant 2 : index
    %c1_91 = arith.constant 1 : index
    %c0_92 = arith.constant 0 : index
    %c0_93 = arith.constant 0 : index
    %91 = vector.load %arg2[%c2_90, %c1_91, %c0_92, %c0_93] : memref<8x3x1x128xf32, #tpu.memory_space<vmem>>, vector<1x1x1x128xf32>
    %92 = vector.shape_cast %91 : vector<1x1x1x128xf32> to vector<1x128xf32>
    %93 = vector.broadcast %92 : vector<1x128xf32> to vector<8x128xf32>
    %94 = arith.mulf %90, %93 : vector<8x128xf32>
    %95 = arith.addf %88, %94 : vector<8x128xf32>
    %c2_94 = arith.constant 2 : index
    %c2_95 = arith.constant 2 : index
    %c0_96 = arith.constant 0 : index
    %c0_97 = arith.constant 0 : index
    %96 = vector.load %arg1[%c2_94, %c2_95, %c0_96, %c0_97] : memref<8x3x8x128xf32, #tpu.memory_space<vmem>>, vector<1x1x8x128xf32>
    %97 = vector.shape_cast %96 : vector<1x1x8x128xf32> to vector<8x128xf32>
    %c2_98 = arith.constant 2 : index
    %c2_99 = arith.constant 2 : index
    %c0_100 = arith.constant 0 : index
    %c0_101 = arith.constant 0 : index
    %98 = vector.load %arg2[%c2_98, %c2_99, %c0_100, %c0_101] : memref<8x3x1x128xf32, #tpu.memory_space<vmem>>, vector<1x1x1x128xf32>
    %99 = vector.shape_cast %98 : vector<1x1x1x128xf32> to vector<1x128xf32>
    %100 = vector.broadcast %99 : vector<1x128xf32> to vector<8x128xf32>
    %101 = arith.mulf %97, %100 : vector<8x128xf32>
    %102 = arith.addf %95, %101 : vector<8x128xf32>
    %103 = math.tanh %102 : vector<8x128xf32>
    %104 = arith.truncf %103 : vector<8x128xf32> to vector<8x128xbf16>
    %c2_102 = arith.constant 2 : index
    %c0_103 = arith.constant 0 : index
    %c0_104 = arith.constant 0 : index
    %c0_105 = arith.constant 0 : index
    %105 = vector.load %arg4[%c2_102, %c0_103, %c0_104, %c0_105] : memref<8x1x128x128xbf16, #tpu.memory_space<vmem>>, vector<1x1x128x128xbf16>
    %106 = vector.shape_cast %105 : vector<1x1x128x128xbf16> to vector<128x128xbf16>
    %cst_106 = arith.constant dense<0.000000e+00> : vector<8x128xf32>
    %107 = tpu.matmul %104, %106, %cst_106 {dimension_numbers = #tpu.dot_dimension_numbers<[1], [0], [0], [1], [0, 0, 1, 1], [], []>} : vector<8x128xbf16>, vector<128x128xbf16>, vector<8x128xf32> -> vector<8x128xf32>
    %c2_107 = arith.constant 2 : index
    %c0_108 = arith.constant 0 : index
    %c0_109 = arith.constant 0 : index
    %c0_110 = arith.constant 0 : index
    %108 = vector.load %arg5[%c2_107, %c0_108, %c0_109, %c0_110] : memref<8x1x1x128xf32, #tpu.memory_space<vmem>>, vector<1x1x1x128xf32>
    %109 = vector.shape_cast %108 : vector<1x1x1x128xf32> to vector<1x128xf32>
    %110 = vector.broadcast %109 : vector<1x128xf32> to vector<8x128xf32>
    %111 = arith.addf %107, %110 : vector<8x128xf32>
    %112 = math.tanh %111 : vector<8x128xf32>
    %c2_111 = arith.constant 2 : index
    %c0_112 = arith.constant 0 : index
    %c0_113 = arith.constant 0 : index
    %113 = vector.load %arg6[%c2_111, %c0_112, %c0_113] : memref<8x1x128xf32, #tpu.memory_space<vmem>>, vector<1x1x128xf32>
    %114 = vector.shape_cast %113 : vector<1x1x128xf32> to vector<1x128xf32>
    %115 = vector.broadcast %114 : vector<1x128xf32> to vector<8x128xf32>
    %116 = arith.mulf %112, %115 : vector<8x128xf32>
    %117 = arith.addf %78, %116 : vector<8x128xf32>
    %c3 = arith.constant 3 : index
    %c0_114 = arith.constant 0 : index
    %c0_115 = arith.constant 0 : index
    %118 = vector.load %arg3[%c3, %c0_114, %c0_115] : memref<8x1x128xf32, #tpu.memory_space<vmem>>, vector<1x1x128xf32>
    %119 = vector.shape_cast %118 : vector<1x1x128xf32> to vector<1x128xf32>
    %c3_116 = arith.constant 3 : index
    %c0_117 = arith.constant 0 : index
    %c0_118 = arith.constant 0 : index
    %c0_119 = arith.constant 0 : index
    %120 = vector.load %arg1[%c3_116, %c0_117, %c0_118, %c0_119] : memref<8x3x8x128xf32, #tpu.memory_space<vmem>>, vector<1x1x8x128xf32>
    %121 = vector.shape_cast %120 : vector<1x1x8x128xf32> to vector<8x128xf32>
    %c3_120 = arith.constant 3 : index
    %c0_121 = arith.constant 0 : index
    %c0_122 = arith.constant 0 : index
    %c0_123 = arith.constant 0 : index
    %122 = vector.load %arg2[%c3_120, %c0_121, %c0_122, %c0_123] : memref<8x3x1x128xf32, #tpu.memory_space<vmem>>, vector<1x1x1x128xf32>
    %123 = vector.shape_cast %122 : vector<1x1x1x128xf32> to vector<1x128xf32>
    %124 = vector.broadcast %123 : vector<1x128xf32> to vector<8x128xf32>
    %125 = arith.mulf %121, %124 : vector<8x128xf32>
    %126 = vector.broadcast %119 : vector<1x128xf32> to vector<8x128xf32>
    %127 = arith.addf %126, %125 : vector<8x128xf32>
    %c3_124 = arith.constant 3 : index
    %c1_125 = arith.constant 1 : index
    %c0_126 = arith.constant 0 : index
    %c0_127 = arith.constant 0 : index
    %128 = vector.load %arg1[%c3_124, %c1_125, %c0_126, %c0_127] : memref<8x3x8x128xf32, #tpu.memory_space<vmem>>, vector<1x1x8x128xf32>
    %129 = vector.shape_cast %128 : vector<1x1x8x128xf32> to vector<8x128xf32>
    %c3_128 = arith.constant 3 : index
    %c1_129 = arith.constant 1 : index
    %c0_130 = arith.constant 0 : index
    %c0_131 = arith.constant 0 : index
    %130 = vector.load %arg2[%c3_128, %c1_129, %c0_130, %c0_131] : memref<8x3x1x128xf32, #tpu.memory_space<vmem>>, vector<1x1x1x128xf32>
    %131 = vector.shape_cast %130 : vector<1x1x1x128xf32> to vector<1x128xf32>
    %132 = vector.broadcast %131 : vector<1x128xf32> to vector<8x128xf32>
    %133 = arith.mulf %129, %132 : vector<8x128xf32>
    %134 = arith.addf %127, %133 : vector<8x128xf32>
    %c3_132 = arith.constant 3 : index
    %c2_133 = arith.constant 2 : index
    %c0_134 = arith.constant 0 : index
    %c0_135 = arith.constant 0 : index
    %135 = vector.load %arg1[%c3_132, %c2_133, %c0_134, %c0_135] : memref<8x3x8x128xf32, #tpu.memory_space<vmem>>, vector<1x1x8x128xf32>
    %136 = vector.shape_cast %135 : vector<1x1x8x128xf32> to vector<8x128xf32>
    %c3_136 = arith.constant 3 : index
    %c2_137 = arith.constant 2 : index
    %c0_138 = arith.constant 0 : index
    %c0_139 = arith.constant 0 : index
    %137 = vector.load %arg2[%c3_136, %c2_137, %c0_138, %c0_139] : memref<8x3x1x128xf32, #tpu.memory_space<vmem>>, vector<1x1x1x128xf32>
    %138 = vector.shape_cast %137 : vector<1x1x1x128xf32> to vector<1x128xf32>
    %139 = vector.broadcast %138 : vector<1x128xf32> to vector<8x128xf32>
    %140 = arith.mulf %136, %139 : vector<8x128xf32>
    %141 = arith.addf %134, %140 : vector<8x128xf32>
    %142 = math.tanh %141 : vector<8x128xf32>
    %143 = arith.truncf %142 : vector<8x128xf32> to vector<8x128xbf16>
    %c3_140 = arith.constant 3 : index
    %c0_141 = arith.constant 0 : index
    %c0_142 = arith.constant 0 : index
    %c0_143 = arith.constant 0 : index
    %144 = vector.load %arg4[%c3_140, %c0_141, %c0_142, %c0_143] : memref<8x1x128x128xbf16, #tpu.memory_space<vmem>>, vector<1x1x128x128xbf16>
    %145 = vector.shape_cast %144 : vector<1x1x128x128xbf16> to vector<128x128xbf16>
    %cst_144 = arith.constant dense<0.000000e+00> : vector<8x128xf32>
    %146 = tpu.matmul %143, %145, %cst_144 {dimension_numbers = #tpu.dot_dimension_numbers<[1], [0], [0], [1], [0, 0, 1, 1], [], []>} : vector<8x128xbf16>, vector<128x128xbf16>, vector<8x128xf32> -> vector<8x128xf32>
    %c3_145 = arith.constant 3 : index
    %c0_146 = arith.constant 0 : index
    %c0_147 = arith.constant 0 : index
    %c0_148 = arith.constant 0 : index
    %147 = vector.load %arg5[%c3_145, %c0_146, %c0_147, %c0_148] : memref<8x1x1x128xf32, #tpu.memory_space<vmem>>, vector<1x1x1x128xf32>
    %148 = vector.shape_cast %147 : vector<1x1x1x128xf32> to vector<1x128xf32>
    %149 = vector.broadcast %148 : vector<1x128xf32> to vector<8x128xf32>
    %150 = arith.addf %146, %149 : vector<8x128xf32>
    %151 = math.tanh %150 : vector<8x128xf32>
    %c3_149 = arith.constant 3 : index
    %c0_150 = arith.constant 0 : index
    %c0_151 = arith.constant 0 : index
    %152 = vector.load %arg6[%c3_149, %c0_150, %c0_151] : memref<8x1x128xf32, #tpu.memory_space<vmem>>, vector<1x1x128xf32>
    %153 = vector.shape_cast %152 : vector<1x1x128xf32> to vector<1x128xf32>
    %154 = vector.broadcast %153 : vector<1x128xf32> to vector<8x128xf32>
    %155 = arith.mulf %151, %154 : vector<8x128xf32>
    %156 = arith.addf %117, %155 : vector<8x128xf32>
    %c4 = arith.constant 4 : index
    %c0_152 = arith.constant 0 : index
    %c0_153 = arith.constant 0 : index
    %157 = vector.load %arg3[%c4, %c0_152, %c0_153] : memref<8x1x128xf32, #tpu.memory_space<vmem>>, vector<1x1x128xf32>
    %158 = vector.shape_cast %157 : vector<1x1x128xf32> to vector<1x128xf32>
    %c4_154 = arith.constant 4 : index
    %c0_155 = arith.constant 0 : index
    %c0_156 = arith.constant 0 : index
    %c0_157 = arith.constant 0 : index
    %159 = vector.load %arg1[%c4_154, %c0_155, %c0_156, %c0_157] : memref<8x3x8x128xf32, #tpu.memory_space<vmem>>, vector<1x1x8x128xf32>
    %160 = vector.shape_cast %159 : vector<1x1x8x128xf32> to vector<8x128xf32>
    %c4_158 = arith.constant 4 : index
    %c0_159 = arith.constant 0 : index
    %c0_160 = arith.constant 0 : index
    %c0_161 = arith.constant 0 : index
    %161 = vector.load %arg2[%c4_158, %c0_159, %c0_160, %c0_161] : memref<8x3x1x128xf32, #tpu.memory_space<vmem>>, vector<1x1x1x128xf32>
    %162 = vector.shape_cast %161 : vector<1x1x1x128xf32> to vector<1x128xf32>
    %163 = vector.broadcast %162 : vector<1x128xf32> to vector<8x128xf32>
    %164 = arith.mulf %160, %163 : vector<8x128xf32>
    %165 = vector.broadcast %158 : vector<1x128xf32> to vector<8x128xf32>
    %166 = arith.addf %165, %164 : vector<8x128xf32>
    %c4_162 = arith.constant 4 : index
    %c1_163 = arith.constant 1 : index
    %c0_164 = arith.constant 0 : index
    %c0_165 = arith.constant 0 : index
    %167 = vector.load %arg1[%c4_162, %c1_163, %c0_164, %c0_165] : memref<8x3x8x128xf32, #tpu.memory_space<vmem>>, vector<1x1x8x128xf32>
    %168 = vector.shape_cast %167 : vector<1x1x8x128xf32> to vector<8x128xf32>
    %c4_166 = arith.constant 4 : index
    %c1_167 = arith.constant 1 : index
    %c0_168 = arith.constant 0 : index
    %c0_169 = arith.constant 0 : index
    %169 = vector.load %arg2[%c4_166, %c1_167, %c0_168, %c0_169] : memref<8x3x1x128xf32, #tpu.memory_space<vmem>>, vector<1x1x1x128xf32>
    %170 = vector.shape_cast %169 : vector<1x1x1x128xf32> to vector<1x128xf32>
    %171 = vector.broadcast %170 : vector<1x128xf32> to vector<8x128xf32>
    %172 = arith.mulf %168, %171 : vector<8x128xf32>
    %173 = arith.addf %166, %172 : vector<8x128xf32>
    %c4_170 = arith.constant 4 : index
    %c2_171 = arith.constant 2 : index
    %c0_172 = arith.constant 0 : index
    %c0_173 = arith.constant 0 : index
    %174 = vector.load %arg1[%c4_170, %c2_171, %c0_172, %c0_173] : memref<8x3x8x128xf32, #tpu.memory_space<vmem>>, vector<1x1x8x128xf32>
    %175 = vector.shape_cast %174 : vector<1x1x8x128xf32> to vector<8x128xf32>
    %c4_174 = arith.constant 4 : index
    %c2_175 = arith.constant 2 : index
    %c0_176 = arith.constant 0 : index
    %c0_177 = arith.constant 0 : index
    %176 = vector.load %arg2[%c4_174, %c2_175, %c0_176, %c0_177] : memref<8x3x1x128xf32, #tpu.memory_space<vmem>>, vector<1x1x1x128xf32>
    %177 = vector.shape_cast %176 : vector<1x1x1x128xf32> to vector<1x128xf32>
    %178 = vector.broadcast %177 : vector<1x128xf32> to vector<8x128xf32>
    %179 = arith.mulf %175, %178 : vector<8x128xf32>
    %180 = arith.addf %173, %179 : vector<8x128xf32>
    %181 = math.tanh %180 : vector<8x128xf32>
    %182 = arith.truncf %181 : vector<8x128xf32> to vector<8x128xbf16>
    %c4_178 = arith.constant 4 : index
    %c0_179 = arith.constant 0 : index
    %c0_180 = arith.constant 0 : index
    %c0_181 = arith.constant 0 : index
    %183 = vector.load %arg4[%c4_178, %c0_179, %c0_180, %c0_181] : memref<8x1x128x128xbf16, #tpu.memory_space<vmem>>, vector<1x1x128x128xbf16>
    %184 = vector.shape_cast %183 : vector<1x1x128x128xbf16> to vector<128x128xbf16>
    %cst_182 = arith.constant dense<0.000000e+00> : vector<8x128xf32>
    %185 = tpu.matmul %182, %184, %cst_182 {dimension_numbers = #tpu.dot_dimension_numbers<[1], [0], [0], [1], [0, 0, 1, 1], [], []>} : vector<8x128xbf16>, vector<128x128xbf16>, vector<8x128xf32> -> vector<8x128xf32>
    %c4_183 = arith.constant 4 : index
    %c0_184 = arith.constant 0 : index
    %c0_185 = arith.constant 0 : index
    %c0_186 = arith.constant 0 : index
    %186 = vector.load %arg5[%c4_183, %c0_184, %c0_185, %c0_186] : memref<8x1x1x128xf32, #tpu.memory_space<vmem>>, vector<1x1x1x128xf32>
    %187 = vector.shape_cast %186 : vector<1x1x1x128xf32> to vector<1x128xf32>
    %188 = vector.broadcast %187 : vector<1x128xf32> to vector<8x128xf32>
    %189 = arith.addf %185, %188 : vector<8x128xf32>
    %190 = math.tanh %189 : vector<8x128xf32>
    %c4_187 = arith.constant 4 : index
    %c0_188 = arith.constant 0 : index
    %c0_189 = arith.constant 0 : index
    %191 = vector.load %arg6[%c4_187, %c0_188, %c0_189] : memref<8x1x128xf32, #tpu.memory_space<vmem>>, vector<1x1x128xf32>
    %192 = vector.shape_cast %191 : vector<1x1x128xf32> to vector<1x128xf32>
    %193 = vector.broadcast %192 : vector<1x128xf32> to vector<8x128xf32>
    %194 = arith.mulf %190, %193 : vector<8x128xf32>
    %195 = arith.addf %156, %194 : vector<8x128xf32>
    %c5 = arith.constant 5 : index
    %c0_190 = arith.constant 0 : index
    %c0_191 = arith.constant 0 : index
    %196 = vector.load %arg3[%c5, %c0_190, %c0_191] : memref<8x1x128xf32, #tpu.memory_space<vmem>>, vector<1x1x128xf32>
    %197 = vector.shape_cast %196 : vector<1x1x128xf32> to vector<1x128xf32>
    %c5_192 = arith.constant 5 : index
    %c0_193 = arith.constant 0 : index
    %c0_194 = arith.constant 0 : index
    %c0_195 = arith.constant 0 : index
    %198 = vector.load %arg1[%c5_192, %c0_193, %c0_194, %c0_195] : memref<8x3x8x128xf32, #tpu.memory_space<vmem>>, vector<1x1x8x128xf32>
    %199 = vector.shape_cast %198 : vector<1x1x8x128xf32> to vector<8x128xf32>
    %c5_196 = arith.constant 5 : index
    %c0_197 = arith.constant 0 : index
    %c0_198 = arith.constant 0 : index
    %c0_199 = arith.constant 0 : index
    %200 = vector.load %arg2[%c5_196, %c0_197, %c0_198, %c0_199] : memref<8x3x1x128xf32, #tpu.memory_space<vmem>>, vector<1x1x1x128xf32>
    %201 = vector.shape_cast %200 : vector<1x1x1x128xf32> to vector<1x128xf32>
    %202 = vector.broadcast %201 : vector<1x128xf32> to vector<8x128xf32>
    %203 = arith.mulf %199, %202 : vector<8x128xf32>
    %204 = vector.broadcast %197 : vector<1x128xf32> to vector<8x128xf32>
    %205 = arith.addf %204, %203 : vector<8x128xf32>
    %c5_200 = arith.constant 5 : index
    %c1_201 = arith.constant 1 : index
    %c0_202 = arith.constant 0 : index
    %c0_203 = arith.constant 0 : index
    %206 = vector.load %arg1[%c5_200, %c1_201, %c0_202, %c0_203] : memref<8x3x8x128xf32, #tpu.memory_space<vmem>>, vector<1x1x8x128xf32>
    %207 = vector.shape_cast %206 : vector<1x1x8x128xf32> to vector<8x128xf32>
    %c5_204 = arith.constant 5 : index
    %c1_205 = arith.constant 1 : index
    %c0_206 = arith.constant 0 : index
    %c0_207 = arith.constant 0 : index
    %208 = vector.load %arg2[%c5_204, %c1_205, %c0_206, %c0_207] : memref<8x3x1x128xf32, #tpu.memory_space<vmem>>, vector<1x1x1x128xf32>
    %209 = vector.shape_cast %208 : vector<1x1x1x128xf32> to vector<1x128xf32>
    %210 = vector.broadcast %209 : vector<1x128xf32> to vector<8x128xf32>
    %211 = arith.mulf %207, %210 : vector<8x128xf32>
    %212 = arith.addf %205, %211 : vector<8x128xf32>
    %c5_208 = arith.constant 5 : index
    %c2_209 = arith.constant 2 : index
    %c0_210 = arith.constant 0 : index
    %c0_211 = arith.constant 0 : index
    %213 = vector.load %arg1[%c5_208, %c2_209, %c0_210, %c0_211] : memref<8x3x8x128xf32, #tpu.memory_space<vmem>>, vector<1x1x8x128xf32>
    %214 = vector.shape_cast %213 : vector<1x1x8x128xf32> to vector<8x128xf32>
    %c5_212 = arith.constant 5 : index
    %c2_213 = arith.constant 2 : index
    %c0_214 = arith.constant 0 : index
    %c0_215 = arith.constant 0 : index
    %215 = vector.load %arg2[%c5_212, %c2_213, %c0_214, %c0_215] : memref<8x3x1x128xf32, #tpu.memory_space<vmem>>, vector<1x1x1x128xf32>
    %216 = vector.shape_cast %215 : vector<1x1x1x128xf32> to vector<1x128xf32>
    %217 = vector.broadcast %216 : vector<1x128xf32> to vector<8x128xf32>
    %218 = arith.mulf %214, %217 : vector<8x128xf32>
    %219 = arith.addf %212, %218 : vector<8x128xf32>
    %220 = math.tanh %219 : vector<8x128xf32>
    %221 = arith.truncf %220 : vector<8x128xf32> to vector<8x128xbf16>
    %c5_216 = arith.constant 5 : index
    %c0_217 = arith.constant 0 : index
    %c0_218 = arith.constant 0 : index
    %c0_219 = arith.constant 0 : index
    %222 = vector.load %arg4[%c5_216, %c0_217, %c0_218, %c0_219] : memref<8x1x128x128xbf16, #tpu.memory_space<vmem>>, vector<1x1x128x128xbf16>
    %223 = vector.shape_cast %222 : vector<1x1x128x128xbf16> to vector<128x128xbf16>
    %cst_220 = arith.constant dense<0.000000e+00> : vector<8x128xf32>
    %224 = tpu.matmul %221, %223, %cst_220 {dimension_numbers = #tpu.dot_dimension_numbers<[1], [0], [0], [1], [0, 0, 1, 1], [], []>} : vector<8x128xbf16>, vector<128x128xbf16>, vector<8x128xf32> -> vector<8x128xf32>
    %c5_221 = arith.constant 5 : index
    %c0_222 = arith.constant 0 : index
    %c0_223 = arith.constant 0 : index
    %c0_224 = arith.constant 0 : index
    %225 = vector.load %arg5[%c5_221, %c0_222, %c0_223, %c0_224] : memref<8x1x1x128xf32, #tpu.memory_space<vmem>>, vector<1x1x1x128xf32>
    %226 = vector.shape_cast %225 : vector<1x1x1x128xf32> to vector<1x128xf32>
    %227 = vector.broadcast %226 : vector<1x128xf32> to vector<8x128xf32>
    %228 = arith.addf %224, %227 : vector<8x128xf32>
    %229 = math.tanh %228 : vector<8x128xf32>
    %c5_225 = arith.constant 5 : index
    %c0_226 = arith.constant 0 : index
    %c0_227 = arith.constant 0 : index
    %230 = vector.load %arg6[%c5_225, %c0_226, %c0_227] : memref<8x1x128xf32, #tpu.memory_space<vmem>>, vector<1x1x128xf32>
    %231 = vector.shape_cast %230 : vector<1x1x128xf32> to vector<1x128xf32>
    %232 = vector.broadcast %231 : vector<1x128xf32> to vector<8x128xf32>
    %233 = arith.mulf %229, %232 : vector<8x128xf32>
    %234 = arith.addf %195, %233 : vector<8x128xf32>
    %c6 = arith.constant 6 : index
    %c0_228 = arith.constant 0 : index
    %c0_229 = arith.constant 0 : index
    %235 = vector.load %arg3[%c6, %c0_228, %c0_229] : memref<8x1x128xf32, #tpu.memory_space<vmem>>, vector<1x1x128xf32>
    %236 = vector.shape_cast %235 : vector<1x1x128xf32> to vector<1x128xf32>
    %c6_230 = arith.constant 6 : index
    %c0_231 = arith.constant 0 : index
    %c0_232 = arith.constant 0 : index
    %c0_233 = arith.constant 0 : index
    %237 = vector.load %arg1[%c6_230, %c0_231, %c0_232, %c0_233] : memref<8x3x8x128xf32, #tpu.memory_space<vmem>>, vector<1x1x8x128xf32>
    %238 = vector.shape_cast %237 : vector<1x1x8x128xf32> to vector<8x128xf32>
    %c6_234 = arith.constant 6 : index
    %c0_235 = arith.constant 0 : index
    %c0_236 = arith.constant 0 : index
    %c0_237 = arith.constant 0 : index
    %239 = vector.load %arg2[%c6_234, %c0_235, %c0_236, %c0_237] : memref<8x3x1x128xf32, #tpu.memory_space<vmem>>, vector<1x1x1x128xf32>
    %240 = vector.shape_cast %239 : vector<1x1x1x128xf32> to vector<1x128xf32>
    %241 = vector.broadcast %240 : vector<1x128xf32> to vector<8x128xf32>
    %242 = arith.mulf %238, %241 : vector<8x128xf32>
    %243 = vector.broadcast %236 : vector<1x128xf32> to vector<8x128xf32>
    %244 = arith.addf %243, %242 : vector<8x128xf32>
    %c6_238 = arith.constant 6 : index
    %c1_239 = arith.constant 1 : index
    %c0_240 = arith.constant 0 : index
    %c0_241 = arith.constant 0 : index
    %245 = vector.load %arg1[%c6_238, %c1_239, %c0_240, %c0_241] : memref<8x3x8x128xf32, #tpu.memory_space<vmem>>, vector<1x1x8x128xf32>
    %246 = vector.shape_cast %245 : vector<1x1x8x128xf32> to vector<8x128xf32>
    %c6_242 = arith.constant 6 : index
    %c1_243 = arith.constant 1 : index
    %c0_244 = arith.constant 0 : index
    %c0_245 = arith.constant 0 : index
    %247 = vector.load %arg2[%c6_242, %c1_243, %c0_244, %c0_245] : memref<8x3x1x128xf32, #tpu.memory_space<vmem>>, vector<1x1x1x128xf32>
    %248 = vector.shape_cast %247 : vector<1x1x1x128xf32> to vector<1x128xf32>
    %249 = vector.broadcast %248 : vector<1x128xf32> to vector<8x128xf32>
    %250 = arith.mulf %246, %249 : vector<8x128xf32>
    %251 = arith.addf %244, %250 : vector<8x128xf32>
    %c6_246 = arith.constant 6 : index
    %c2_247 = arith.constant 2 : index
    %c0_248 = arith.constant 0 : index
    %c0_249 = arith.constant 0 : index
    %252 = vector.load %arg1[%c6_246, %c2_247, %c0_248, %c0_249] : memref<8x3x8x128xf32, #tpu.memory_space<vmem>>, vector<1x1x8x128xf32>
    %253 = vector.shape_cast %252 : vector<1x1x8x128xf32> to vector<8x128xf32>
    %c6_250 = arith.constant 6 : index
    %c2_251 = arith.constant 2 : index
    %c0_252 = arith.constant 0 : index
    %c0_253 = arith.constant 0 : index
    %254 = vector.load %arg2[%c6_250, %c2_251, %c0_252, %c0_253] : memref<8x3x1x128xf32, #tpu.memory_space<vmem>>, vector<1x1x1x128xf32>
    %255 = vector.shape_cast %254 : vector<1x1x1x128xf32> to vector<1x128xf32>
    %256 = vector.broadcast %255 : vector<1x128xf32> to vector<8x128xf32>
    %257 = arith.mulf %253, %256 : vector<8x128xf32>
    %258 = arith.addf %251, %257 : vector<8x128xf32>
    %259 = math.tanh %258 : vector<8x128xf32>
    %260 = arith.truncf %259 : vector<8x128xf32> to vector<8x128xbf16>
    %c6_254 = arith.constant 6 : index
    %c0_255 = arith.constant 0 : index
    %c0_256 = arith.constant 0 : index
    %c0_257 = arith.constant 0 : index
    %261 = vector.load %arg4[%c6_254, %c0_255, %c0_256, %c0_257] : memref<8x1x128x128xbf16, #tpu.memory_space<vmem>>, vector<1x1x128x128xbf16>
    %262 = vector.shape_cast %261 : vector<1x1x128x128xbf16> to vector<128x128xbf16>
    %cst_258 = arith.constant dense<0.000000e+00> : vector<8x128xf32>
    %263 = tpu.matmul %260, %262, %cst_258 {dimension_numbers = #tpu.dot_dimension_numbers<[1], [0], [0], [1], [0, 0, 1, 1], [], []>} : vector<8x128xbf16>, vector<128x128xbf16>, vector<8x128xf32> -> vector<8x128xf32>
    %c6_259 = arith.constant 6 : index
    %c0_260 = arith.constant 0 : index
    %c0_261 = arith.constant 0 : index
    %c0_262 = arith.constant 0 : index
    %264 = vector.load %arg5[%c6_259, %c0_260, %c0_261, %c0_262] : memref<8x1x1x128xf32, #tpu.memory_space<vmem>>, vector<1x1x1x128xf32>
    %265 = vector.shape_cast %264 : vector<1x1x1x128xf32> to vector<1x128xf32>
    %266 = vector.broadcast %265 : vector<1x128xf32> to vector<8x128xf32>
    %267 = arith.addf %263, %266 : vector<8x128xf32>
    %268 = math.tanh %267 : vector<8x128xf32>
    %c6_263 = arith.constant 6 : index
    %c0_264 = arith.constant 0 : index
    %c0_265 = arith.constant 0 : index
    %269 = vector.load %arg6[%c6_263, %c0_264, %c0_265] : memref<8x1x128xf32, #tpu.memory_space<vmem>>, vector<1x1x128xf32>
    %270 = vector.shape_cast %269 : vector<1x1x128xf32> to vector<1x128xf32>
    %271 = vector.broadcast %270 : vector<1x128xf32> to vector<8x128xf32>
    %272 = arith.mulf %268, %271 : vector<8x128xf32>
    %273 = arith.addf %234, %272 : vector<8x128xf32>
    %c7 = arith.constant 7 : index
    %c0_266 = arith.constant 0 : index
    %c0_267 = arith.constant 0 : index
    %274 = vector.load %arg3[%c7, %c0_266, %c0_267] : memref<8x1x128xf32, #tpu.memory_space<vmem>>, vector<1x1x128xf32>
    %275 = vector.shape_cast %274 : vector<1x1x128xf32> to vector<1x128xf32>
    %c7_268 = arith.constant 7 : index
    %c0_269 = arith.constant 0 : index
    %c0_270 = arith.constant 0 : index
    %c0_271 = arith.constant 0 : index
    %276 = vector.load %arg1[%c7_268, %c0_269, %c0_270, %c0_271] : memref<8x3x8x128xf32, #tpu.memory_space<vmem>>, vector<1x1x8x128xf32>
    %277 = vector.shape_cast %276 : vector<1x1x8x128xf32> to vector<8x128xf32>
    %c7_272 = arith.constant 7 : index
    %c0_273 = arith.constant 0 : index
    %c0_274 = arith.constant 0 : index
    %c0_275 = arith.constant 0 : index
    %278 = vector.load %arg2[%c7_272, %c0_273, %c0_274, %c0_275] : memref<8x3x1x128xf32, #tpu.memory_space<vmem>>, vector<1x1x1x128xf32>
    %279 = vector.shape_cast %278 : vector<1x1x1x128xf32> to vector<1x128xf32>
    %280 = vector.broadcast %279 : vector<1x128xf32> to vector<8x128xf32>
    %281 = arith.mulf %277, %280 : vector<8x128xf32>
    %282 = vector.broadcast %275 : vector<1x128xf32> to vector<8x128xf32>
    %283 = arith.addf %282, %281 : vector<8x128xf32>
    %c7_276 = arith.constant 7 : index
    %c1_277 = arith.constant 1 : index
    %c0_278 = arith.constant 0 : index
    %c0_279 = arith.constant 0 : index
    %284 = vector.load %arg1[%c7_276, %c1_277, %c0_278, %c0_279] : memref<8x3x8x128xf32, #tpu.memory_space<vmem>>, vector<1x1x8x128xf32>
    %285 = vector.shape_cast %284 : vector<1x1x8x128xf32> to vector<8x128xf32>
    %c7_280 = arith.constant 7 : index
    %c1_281 = arith.constant 1 : index
    %c0_282 = arith.constant 0 : index
    %c0_283 = arith.constant 0 : index
    %286 = vector.load %arg2[%c7_280, %c1_281, %c0_282, %c0_283] : memref<8x3x1x128xf32, #tpu.memory_space<vmem>>, vector<1x1x1x128xf32>
    %287 = vector.shape_cast %286 : vector<1x1x1x128xf32> to vector<1x128xf32>
    %288 = vector.broadcast %287 : vector<1x128xf32> to vector<8x128xf32>
    %289 = arith.mulf %285, %288 : vector<8x128xf32>
    %290 = arith.addf %283, %289 : vector<8x128xf32>
    %c7_284 = arith.constant 7 : index
    %c2_285 = arith.constant 2 : index
    %c0_286 = arith.constant 0 : index
    %c0_287 = arith.constant 0 : index
    %291 = vector.load %arg1[%c7_284, %c2_285, %c0_286, %c0_287] : memref<8x3x8x128xf32, #tpu.memory_space<vmem>>, vector<1x1x8x128xf32>
    %292 = vector.shape_cast %291 : vector<1x1x8x128xf32> to vector<8x128xf32>
    %c7_288 = arith.constant 7 : index
    %c2_289 = arith.constant 2 : index
    %c0_290 = arith.constant 0 : index
    %c0_291 = arith.constant 0 : index
    %293 = vector.load %arg2[%c7_288, %c2_289, %c0_290, %c0_291] : memref<8x3x1x128xf32, #tpu.memory_space<vmem>>, vector<1x1x1x128xf32>
    %294 = vector.shape_cast %293 : vector<1x1x1x128xf32> to vector<1x128xf32>
    %295 = vector.broadcast %294 : vector<1x128xf32> to vector<8x128xf32>
    %296 = arith.mulf %292, %295 : vector<8x128xf32>
    %297 = arith.addf %290, %296 : vector<8x128xf32>
    %298 = math.tanh %297 : vector<8x128xf32>
    %299 = arith.truncf %298 : vector<8x128xf32> to vector<8x128xbf16>
    %c7_292 = arith.constant 7 : index
    %c0_293 = arith.constant 0 : index
    %c0_294 = arith.constant 0 : index
    %c0_295 = arith.constant 0 : index
    %300 = vector.load %arg4[%c7_292, %c0_293, %c0_294, %c0_295] : memref<8x1x128x128xbf16, #tpu.memory_space<vmem>>, vector<1x1x128x128xbf16>
    %301 = vector.shape_cast %300 : vector<1x1x128x128xbf16> to vector<128x128xbf16>
    %cst_296 = arith.constant dense<0.000000e+00> : vector<8x128xf32>
    %302 = tpu.matmul %299, %301, %cst_296 {dimension_numbers = #tpu.dot_dimension_numbers<[1], [0], [0], [1], [0, 0, 1, 1], [], []>} : vector<8x128xbf16>, vector<128x128xbf16>, vector<8x128xf32> -> vector<8x128xf32>
    %c7_297 = arith.constant 7 : index
    %c0_298 = arith.constant 0 : index
    %c0_299 = arith.constant 0 : index
    %c0_300 = arith.constant 0 : index
    %303 = vector.load %arg5[%c7_297, %c0_298, %c0_299, %c0_300] : memref<8x1x1x128xf32, #tpu.memory_space<vmem>>, vector<1x1x1x128xf32>
    %304 = vector.shape_cast %303 : vector<1x1x1x128xf32> to vector<1x128xf32>
    %305 = vector.broadcast %304 : vector<1x128xf32> to vector<8x128xf32>
    %306 = arith.addf %302, %305 : vector<8x128xf32>
    %307 = math.tanh %306 : vector<8x128xf32>
    %c7_301 = arith.constant 7 : index
    %c0_302 = arith.constant 0 : index
    %c0_303 = arith.constant 0 : index
    %308 = vector.load %arg6[%c7_301, %c0_302, %c0_303] : memref<8x1x128xf32, #tpu.memory_space<vmem>>, vector<1x1x128xf32>
    %309 = vector.shape_cast %308 : vector<1x1x128xf32> to vector<1x128xf32>
    %310 = vector.broadcast %309 : vector<1x128xf32> to vector<8x128xf32>
    %311 = arith.mulf %307, %310 : vector<8x128xf32>
    %312 = arith.addf %273, %311 : vector<8x128xf32>
    %c0_304 = arith.constant 0 : index
    %c0_305 = arith.constant 0 : index
    %c0_306 = arith.constant 0 : index
    %313 = vector.load %arg7[%c0_304, %c0_305, %c0_306] : memref<1x8x128xf32, #tpu.memory_space<vmem>>, vector<1x8x128xf32>
    %314 = vector.shape_cast %313 : vector<1x8x128xf32> to vector<8x128xf32>
    %315 = vector.shape_cast %312 : vector<8x128xf32> to vector<1x8x128xf32>
    tpu.vector_store %arg7[%c0_304, %c0_305, %c0_306], %315 {strides = array<i32>} : memref<1x8x128xf32, #tpu.memory_space<vmem>>, vector<1x8x128xf32>,
    return
  }
  func.func @transform_0(%arg0: i32) -> (i32, i32, i32, i32) {
    %c0_i32 = arith.constant 0 : i32
    %c0_i32_0 = arith.constant 0 : i32
    %c0_i32_1 = arith.constant 0 : i32
    %c0_i32_2 = arith.constant 0 : i32
    return %arg0, %c0_i32, %c0_i32_0, %c0_i32_1 : i32, i32, i32, i32
  }
  func.func @transform_1(%arg0: i32) -> (i32, i32, i32, i32) {
    %c0_i32 = arith.constant 0 : i32
    %c0_i32_0 = arith.constant 0 : i32
    %c0_i32_1 = arith.constant 0 : i32
    %c0_i32_2 = arith.constant 0 : i32
    return %arg0, %c0_i32, %c0_i32_0, %c0_i32_1 : i32, i32, i32, i32
  }
  func.func @transform_2(%arg0: i32) -> (i32, i32, i32) {
    %c0_i32 = arith.constant 0 : i32
    %c0_i32_0 = arith.constant 0 : i32
    %c0_i32_1 = arith.constant 0 : i32
    return %arg0, %c0_i32, %c0_i32_0 : i32, i32, i32
  }
  func.func @transform_3(%arg0: i32) -> (i32, i32, i32, i32) {
    %c0_i32 = arith.constant 0 : i32
    %c0_i32_0 = arith.constant 0 : i32
    %c0_i32_1 = arith.constant 0 : i32
    %c0_i32_2 = arith.constant 0 : i32
    return %arg0, %c0_i32, %c0_i32_0, %c0_i32_1 : i32, i32, i32, i32
  }
  func.func @transform_4(%arg0: i32) -> (i32, i32, i32, i32) {
    %c0_i32 = arith.constant 0 : i32
    %c0_i32_0 = arith.constant 0 : i32
    %c0_i32_1 = arith.constant 0 : i32
    %c0_i32_2 = arith.constant 0 : i32
    return %arg0, %c0_i32, %c0_i32_0, %c0_i32_1 : i32, i32, i32, i32
  }
  func.func @transform_5(%arg0: i32) -> (i32, i32, i32) {
    %c0_i32 = arith.constant 0 : i32
    %c0_i32_0 = arith.constant 0 : i32
    %c0_i32_1 = arith.constant 0 : i32
    return %arg0, %c0_i32, %c0_i32_0 : i32, i32, i32
  }
  func.func @transform_6(%arg0: i32) -> (i32, i32, i32) {
    %c0_i32 = arith.constant 0 : i32
    %c0_i32_0 = arith.constant 0 : i32
    %c0_i32_1 = arith.constant 0 : i32
    return %arg0, %c0_i32, %c0_i32_0 : i32, i32, i32
  }
}

</mosaic_0001>

<bundles_post_ra>
// kernel: fwd.1
= control target key start
LH: loop header
LB: loop body
LE: loop exit
PB: predicated region body
PF: predicated region fallthrough
CT: control target
= control target key end

     0   :  { %s2513_s21 = smov 0   ;;  %s2786_s0 = inlined_call_operand.vmem [shape: f32[32,3,8,128], index: 0, kind: input, shape index: {}]   ;;  %s2787_s1 = inlined_call_operand.vmem [shape: f32[32,3,1,128], index: 1, kind: input, shape index: {}]   ;;  %s2788_s2 = inlined_call_operand.vmem [shape: f32[32,1,128], index: 2, kind: input, shape index: {}]   ;;  %s2789_s3 = inlined_call_operand.vmem [shape: bf16[32,1,128,128], index: 3, kind: input, shape index: {}]   ;;  %s2790_s4 = inlined_call_operand.vmem [shape: f32[32,1,1,128], index: 4, kind: input, shape index: {}]   ;;  %s2791_s5 = inlined_call_operand.vmem [shape: f32[32,1,128], index: 5, kind: input, shape index: {}]   ;;  %s2792_s6 = inlined_call_operand.vmem [shape: f32[4,8,128], index: 6, kind: output, shape index: {}]  }
   0x1 LB: > { %s2519_s22 = sadd.s32 4294967295, %s2474_s21   ;;  %p1823_p0 = scmp.ge.s32.totalorder %s2474_s21, 1  ;;  %s2474_s21 = sphi %s2513_s21, %s16_s21  }
   0x2   : > { %p267_p1 = scmp.lt.s32.totalorder %s2474_s21, 5 }
   0x4   : > { %p268_p2 = pnand %p1823_p0, %p267_p1 }
   0x5   : > { %s1824_s23 = sshll.u32 (!%p268_p2), %s2519_s22, 3  ;;  %v2476_v0 = vmov (!%p268_p2), 0.0   ;;  %vm2477_vm0 = vmmov (!%p268_p2), 0   ;;  %p355_p4 = scmp.lt.s32.totalorder (!%p268_p2), %s2519_s22, 3 }
   0x6   : > { %271 = sbr.rel (%p268_p2) target bundleno = 376 (0x178), region = 44  ;;  %2200 = vmatprep.subr.bf16.mxu0 (!%p268_p2), %v2476_v0  ;;  %2220 = vmatprep.subr.bf16.mxu1 (!%p268_p2), %v2476_v0  ;;  %p321_p3 = scmp.lt.s32.totalorder (!%p268_p2), %s1824_s23, 31 }
   0x7   : > { %2216 = vmatprep.mubr.msk.bf16.mxu0 (!%p268_p2), %vm2477_vm0, %v2476_v0  ;;  %2236 = vmatprep.mubr.msk.bf16.mxu1 (!%p268_p2), %vm2477_vm0, %v2476_v0 }
   0xd   : > { %s2794_s23 = smov (!%p321_p3, %s1824_s23), 31  ;;  %s2796_s22 = smov (!%p355_p4, %s2519_s22), 3 }
   0xe   : > { %s2127_s24 = sshll.u32 %s2794_s23, 6  ;;  %s2360_s28 = smul.u32 24, %s2794_s23 }
   0xf   : > { %s2536_s27 = scalar_lea.vmem %s2789_s3, %s2127_s24  ;;  %s2361_s29 = smul.u32 3, %s2794_s23 }
  0x10   : > { %v2372_v1 = vld [vmem:[%s2536_s27] sm:$0xff]   ;;  %v2374_v3 = vld [vmem:[%s2536_s27 + $0x8] sm:$0xff]   ;;  %v2376_v5 = vld [vmem:[%s2536_s27 + $0x10] sm:$0xff]   ;;  %s2557_s8 = scalar_lea.vmem %s2786_s0, %s2360_s28  ;;  %s2568_s14 = scalar_lea.vmem %s2788_s2, %s2794_s23 }
  0x11   : > { %v2373_v2 = vld [vmem:[%s2536_s27 + $0x40] sm:$0xff]   ;;  %2201 = vmatpush3.bf16.msra.mxu0 %v2372_v1  ;;  %v2375_v4 = vld [vmem:[%s2536_s27 + $0x48] sm:$0xff]   ;;  %v2377_v6 = vld [vmem:[%s2536_s27 + $0x50] sm:$0xff]   ;;  %s2562_s11 = scalar_lea.vmem %s2787_s1, %s2361_s29  ;;  %s2754_s17 = scalar_lea.vmem %s2790_s4, %s2794_s23 }
  0x12   : > { %2221 = vmatpush3.bf16.msra.mxu1 %v2373_v2  ;;  %2202 = vmatprep.subr.bf16.mxu0 %v2476_v0  ;;  %v2378_v7 = vld [vmem:[%s2536_s27 + $0x18] sm:$0xff]   ;;  %v2380_v9 = vld [vmem:[%s2536_s27 + $0x20] sm:$0xff]   ;;  %v2382_v11 = vld [vmem:[%s2536_s27 + $0x28] sm:$0xff]   ;;  %s2762_s20 = scalar_lea.vmem %s2791_s5, %s2794_s23  ;;  %s1833_s23 = sshll.u32 %s2796_s22, 3 }
  0x13   : > { %2222 = vmatprep.subr.bf16.mxu1 %v2476_v0  ;;  %v2379_v8 = vld [vmem:[%s2536_s27 + $0x58] sm:$0xff]   ;;  %v2381_v10 = vld [vmem:[%s2536_s27 + $0x60] sm:$0xff]   ;;  %v2383_v15 = vld [vmem:[%s2536_s27 + $0x68] sm:$0xff]   ;;  %s358_s26 = scalar_lea.vmem %s2792_s6, %s1833_s23 }
  0x14   : > { %v1835_v12 = vld [vmem:[%s2568_s14] ss:$0 sm:$0xff]  ;;  %v1836_v17 = vld [vmem:[%s2557_s8 + $0x8] sm:$0xff]  ;;  %v1838_v18 = vld [vmem:[%s2562_s11 + $0x1] ss:$0 sm:$0xff] }
  0x15   : > { %2203 = vmatpush3.bf16.msra.mxu0 %v2374_v3  ;;  %v361_v13 = vld [vmem:[%s2557_s8] sm:$0xff]  ;;  %v1839_v19 = vld [vmem:[%s2557_s8 + $0x10] sm:$0xff]  ;;  %v387_v20 = vmul.f32 %v1838_v18, %v1836_v17  ;;  %v1853_v23 = vld [vmem:[%s2557_s8 + $0x18] sm:$0xff] }
  0x16   : > { %2223 = vmatpush3.bf16.msra.mxu1 %v2375_v4  ;;  %2204 = vmatprep.subr.bf16.mxu0 %v2476_v0  ;;  %v1834_v14 = vld [vmem:[%s2562_s11] ss:$0 sm:$0xff]  ;;  %v1841_v21 = vld [vmem:[%s2562_s11 + $0x2] ss:$0 sm:$0xff]  ;;  %v1856_v22 = vld [vmem:[%s2568_s14 + $0x1] ss:$0 sm:$0xff] }
  0x17   : > { %2224 = vmatprep.subr.bf16.mxu1 %v2476_v0  ;;  %v369_v16 = vmul.f32 %v1834_v14, %v361_v13  ;;  %v399_v25 = vmul.f32 %v1841_v21, %v1839_v19  ;;  %v1855_v26 = vld [vmem:[%s2562_s11 + $0x3] ss:$0 sm:$0xff]  ;;  %v1859_v28 = vld [vmem:[%s2562_s11 + $0x4] ss:$0 sm:$0xff]  ;;  %v1860_v31 = vld [vmem:[%s2557_s8 + $0x28] sm:$0xff] }
  0x18   : > { %v1857_v27 = vld [vmem:[%s2557_s8 + $0x20] sm:$0xff]  ;;  %v536_v29 = vmul.f32 %v1855_v26, %v1853_v23  ;;  %v2384_v34 = vld [vmem:[%s2536_s27 + $0x30] sm:$0xff]   ;;  %v2386_v40 = vld [vmem:[%s2536_s27 + $0x38] sm:$0xff]  }
  0x19   : > { %2205 = vmatpush3.bf16.msra.mxu0 %v2376_v5  ;;  %v376_v24 = vadd.f32 %v1835_v12, %v369_v16  ;;  %v554_v30 = vmul.f32 %v1859_v28, %v1857_v27  ;;  %v1862_v32 = vld [vmem:[%s2562_s11 + $0x5] ss:$0 sm:$0xff]  ;;  %v2385_v37 = vld [vmem:[%s2536_s27 + $0x70] sm:$0xff]   ;;  %v2387_v42 = vld [vmem:[%s2536_s27 + $0x78] sm:$0xff]  }
  0x1a   : > { %2225 = vmatpush3.bf16.msra.mxu1 %v2377_v6  ;;  %2206 = vmatprep.subr.bf16.mxu0 %v2476_v0  ;;  %v543_v35 = vadd.f32 %v1856_v22, %v536_v29  ;;  %v566_v36 = vmul.f32 %v1862_v32, %v1860_v31  ;;  %v2388_v44 = vld [vmem:[%s2536_s27 + $0x80] sm:$0xff]   ;;  %v1892_v47 = vld [vmem:[%s2557_s8 + $0x30] sm:$0xff]  ;;  %v1896_v52 = vld [vmem:[%s2557_s8 + $0x38] sm:$0xff] }
  0x1b   : > { %2226 = vmatprep.subr.bf16.mxu1 %v2476_v0  ;;  %v388_v33 = vadd.f32 %v387_v20, %v376_v24  ;;  %v2389_v46 = vld [vmem:[%s2536_s27 + $0xc0] sm:$0xff]   ;;  %v2390_v55 = vld [vmem:[%s2536_s27 + $0x88] sm:$0xff]   ;;  %v1935_v62 = vld [vmem:[%s2557_s8 + $0x50] sm:$0xff] }
  0x1c   : > { %v555_v39 = vadd.f32 %v554_v30, %v543_v35  ;;  %v1894_v48 = vld [vmem:[%s2562_s11 + $0x6] ss:$0 sm:$0xff]  ;;  %v1895_v50 = vld [vmem:[%s2568_s14 + $0x2] ss:$0 sm:$0xff]  ;;  %v1898_v53 = vld [vmem:[%s2562_s11 + $0x7] ss:$0 sm:$0xff] }
  0x1d   : > { %2207 = vmatpush3.bf16.msra.mxu0 %v2378_v7  ;;  %v400_v38 = vadd.f32 %v399_v25, %v388_v33  ;;  %v706_v51 = vmul.f32 %v1894_v48, %v1892_v47  ;;  %v1931_v56 = vld [vmem:[%s2557_s8 + $0x48] sm:$0xff]  ;;  %v1899_v59 = vld [vmem:[%s2557_s8 + $0x40] sm:$0xff]  ;;  %v724_v1 = vmul.f32 %v1898_v53, %v1896_v52  ;;  %v2392_v4 = vld [vmem:[%s2536_s27 + $0x90] sm:$0xff]  }
  0x1e   : > { %2227 = vmatpush3.bf16.msra.mxu1 %v2379_v8  ;;  %2208 = vmatprep.subr.bf16.mxu0 %v2476_v0  ;;  %v567_v41 = vadd.f32 %v566_v36, %v555_v39  ;;  %v1933_v57 = vld [vmem:[%s2562_s11 + $0x9] ss:$0 sm:$0xff]  ;;  %v1934_v60 = vld [vmem:[%s2568_s14 + $0x3] ss:$0 sm:$0xff]  ;;  %v1937_v2 = vld [vmem:[%s2562_s11 + $0xa] ss:$0 sm:$0xff] }
  0x1f   : > { %2228 = vmatprep.subr.bf16.mxu1 %v2476_v0  ;;  %2436 = vtanh.f32 %v400_v38  ;;  %v2391_v58 = vld [vmem:[%s2536_s27 + $0xc8] sm:$0xff]   ;;  %v876_v61 = vmul.f32 %v1933_v57, %v1931_v56  ;;  %v713_v63 = vadd.f32 %v1895_v50, %v706_v51  ;;  %v894_v6 = vmul.f32 %v1937_v2, %v1935_v62  ;;  %v1938_v7 = vld [vmem:[%s2557_s8 + $0x58] sm:$0xff]  ;;  %v2396_v17 = vld [vmem:[%s2536_s27 + $0xa0] sm:$0xff]  }
  0x20   : > { %2438 = vtanh.f32 %v567_v41  ;;  %v1901_v3 = vld [vmem:[%s2562_s11 + $0x8] ss:$0 sm:$0xff]  ;;  %v2394_v12 = vld [vmem:[%s2536_s27 + $0x98] sm:$0xff]   ;;  %v2397_v19 = vld [vmem:[%s2536_s27 + $0xe0] sm:$0xff]  }
  0x21   : > { %2209 = vmatpush3.bf16.msra.mxu0 %v2380_v9  ;;  %v883_v5 = vadd.f32 %v1934_v60, %v876_v61  ;;  %v725_v8 = vadd.f32 %v724_v1, %v713_v63  ;;  %v736_v9 = vmul.f32 %v1901_v3, %v1899_v59  ;;  %v2395_v16 = vld [vmem:[%s2536_s27 + $0xd8] sm:$0xff]   ;;  %v2398_v20 = vld [vmem:[%s2536_s27 + $0xa8] sm:$0xff]   ;;  %v2400_v22 = vld [vmem:[%s2536_s27 + $0xb0] sm:$0xff]  }
  0x22   : > { %2229 = vmatpush3.bf16.msra.mxu1 %v2381_v10  ;;  %2210 = vmatprep.subr.bf16.mxu0 %v2476_v0  ;;  %v1940_v10 = vld [vmem:[%s2562_s11 + $0xb] ss:$0 sm:$0xff]  ;;  %v2401_v23 = vld [vmem:[%s2536_s27 + $0xf0] sm:$0xff]   ;;  %v2402_v25 = vld [vmem:[%s2536_s27 + $0xb8] sm:$0xff]  }
  0x23   : > { %2230 = vmatprep.subr.bf16.mxu1 %v2476_v0  ;;  %v895_v13 = vadd.f32 %v894_v6, %v883_v5  ;;  %v906_v14 = vmul.f32 %v1940_v10, %v1938_v7  ;;  %v2399_v21 = vld [vmem:[%s2536_s27 + $0xe8] sm:$0xff]   ;;  %v2403_v26 = vld [vmem:[%s2536_s27 + $0xf8] sm:$0xff]   ;;  %v1970_v27 = vld [vmem:[%s2557_s8 + $0x60] sm:$0xff] }
  0x24   : > { %v1972_v30 = vld [vmem:[%s2562_s11 + $0xc] ss:$0 sm:$0xff]  ;;  %v2404_v31 = vld [vmem:[%s2536_s27 + $0x100] sm:$0xff]   ;;  %v2009_v35 = vld [vmem:[%s2557_s8 + $0x78] sm:$0xff] }
  0x25   : > { %2211 = vmatpush3.bf16.msra.mxu0 %v2382_v11  ;;  %v2393_v11 = vld [vmem:[%s2536_s27 + $0xd0] sm:$0xff]   ;;  %v907_v18 = vadd.f32 %v906_v14, %v895_v13  ;;  %v2405_v32 = vld [vmem:[%s2536_s27 + $0x140] sm:$0xff]   ;;  %v1046_v38 = vmul.f32 %v1972_v30, %v1970_v27  ;;  %v2011_v39 = vld [vmem:[%s2562_s11 + $0xf] ss:$0 sm:$0xff] }
  0x26   : > { %2231 = vmatpush3.bf16.msra.mxu1 %v2383_v15  ;;  %2212 = vmatprep.subr.bf16.mxu0 %v2476_v0  ;;  %v737_v15 = vadd.f32 %v736_v9, %v725_v8  ;;  %v1973_v33 = vld [vmem:[%s2568_s14 + $0x4] ss:$0 sm:$0xff]  ;;  %v2012_v41 = vld [vmem:[%s2568_s14 + $0x5] ss:$0 sm:$0xff]  ;;  %v2015_v48 = vld [vmem:[%s2562_s11 + $0x10] ss:$0 sm:$0xff] }
  0x27   : > { %2232 = vmatprep.subr.bf16.mxu1 %v2476_v0  ;;  %v2408_v50 = vld [vmem:[%s2536_s27 + $0x110] sm:$0xff]   ;;  %v2016_v53 = vld [vmem:[%s2557_s8 + $0x88] sm:$0xff]  ;;  %v2411_v62 = vld [vmem:[%s2536_s27 + $0x158] sm:$0xff]  }
  0x28   : > { %2440 = vtanh.f32 %v737_v15  ;;  %v2018_v56 = vld [vmem:[%s2562_s11 + $0x11] ss:$0 sm:$0xff]  ;;  %v2412_v63 = vld [vmem:[%s2536_s27 + $0x120] sm:$0xff]   ;;  %v2414_v3 = vld [vmem:[%s2536_s27 + $0x128] sm:$0xff]  }
  0x29   : > { %2213 = vmatpush3.bf16.msra.mxu0 %v2384_v34  ;;  %v2437_v43 = vpop.eup %2436  ;;  %2442 = vtanh.f32 %v907_v18  ;;  %v1974_v34 = vld [vmem:[%s2557_s8 + $0x68] sm:$0xff]  ;;  %v2409_v57 = vld [vmem:[%s2536_s27 + $0x150] sm:$0xff]   ;;  %v1246_v60 = vmul.f32 %v2018_v56, %v2016_v53  ;;  %v2413_v2 = vld [vmem:[%s2536_s27 + $0x160] sm:$0xff]  }
  0x2a   : > { %2233 = vmatpush3.bf16.msra.mxu1 %v2385_v37  ;;  %2214 = vmatprep.subr.bf16.mxu0 %v2476_v0  ;;  %v402_v45 = vpack.c.bf16 %v2437_v43, %v2437_v43  ;;  %v2439_v49 = vpop.eup %2438  ;;  %v2406_v37 = vld [vmem:[%s2536_s27 + $0x108] sm:$0xff]   ;;  %v1977_v43 = vld [vmem:[%s2557_s8 + $0x70] sm:$0xff]  ;;  %v2418_v8 = vld [vmem:[%s2536_s27 + $0x138] sm:$0xff]  }
  0x2b   : > { %2234 = vmatprep.subr.bf16.mxu1 %v2476_v0  ;;  %v569_v54 = vpack.c.bf16 %v2439_v49, %v2439_v49  ;;  %v1979_v49 = vld [vmem:[%s2562_s11 + $0xe] ss:$0 sm:$0xff]  ;;  %v2416_v5 = vld [vmem:[%s2536_s27 + $0x130] sm:$0xff]   ;;  %v2419_v10 = vld [vmem:[%s2536_s27 + $0x178] sm:$0xff]  }
  0x2c   : > { %v2417_v6 = vld [vmem:[%s2536_s27 + $0x170] sm:$0xff]   ;;  %v2420_v14 = vld [vmem:[%s2536_s27 + $0x180] sm:$0xff]   ;;  %v2087_v18 = vld [vmem:[%s2557_s8 + $0xa8] sm:$0xff] }
  0x2d   : > { %2215 = vmatpush3.bf16.msra.mxu0 %v2386_v40  ;;  %v1976_v40 = vld [vmem:[%s2562_s11 + $0xd] ss:$0 sm:$0xff]  ;;  %v2050_v13 = vld [vmem:[%s2562_s11 + $0x12] ss:$0 sm:$0xff]  ;;  %v2090_v27 = vld [vmem:[%s2568_s14 + $0x7] ss:$0 sm:$0xff] }
  0x2e   : > { %2235 = vmatpush3.bf16.msra.mxu1 %v2387_v42  ;;  %2240 = vmatprep.subr.bf16.mxu0 %v2476_v0  ;;  %v2407_v42 = vld [vmem:[%s2536_s27 + $0x148] sm:$0xff]   ;;  %v1064_v47 = vmul.f32 %v1976_v40, %v1974_v34  ;;  %v2425_v40 = vld [vmem:[%s2536_s27 + $0x1d0] sm:$0xff]   ;;  %v2435_v56 = vld [vmem:[%s2536_s27 + $0x1f8] sm:$0xff]  }
  0x2f   : > { %2260 = vmatprep.subr.bf16.mxu1 %v2476_v0  ;;  %v2423_v30 = vld [vmem:[%s2536_s27 + $0x1c8] sm:$0xff]  }
  0x30   : > { %2217 = vmatmul.mubr.bf16.vlgmr.msra.gmra.mrb[0].mxu0 %v402_v45  ;;  %v2013_v45 = vld [vmem:[%s2557_s8 + $0x80] sm:$0xff] }
  0x31   : > { %2241 = vmatpush3.bf16.msra.mxu0 %v2388_v44  ;;  %2256 = vmatprep.mubr.msk.bf16.mxu0 %vm2477_vm0, %v2476_v0  ;;  %v1216_v44 = vmul.f32 %v2011_v39, %v2009_v35  ;;  %v1234_v52 = vmul.f32 %v2015_v48, %v2013_v45  ;;  %v2096_v39 = vld [vmem:[%s2562_s11 + $0x17] ss:$0 sm:$0xff]  ;;  %v2427_v45 = vld [vmem:[%s2536_s27 + $0x1d8] sm:$0xff]   ;;  %v2429_v48 = vld [vmem:[%s2536_s27 + $0x1e0] sm:$0xff]  }
  0x32   : > { %2242 = vmatprep.subr.bf16.mxu0 %v2476_v0  ;;  %2237 = vmatmul.mubr.bf16.vlgmr.msra.gmra.mrb[0].mxu1 %v569_v54  ;;  %v2441_v24 = vpop.eup %2440 }
  0x33   : > { %2261 = vmatpush3.bf16.msra.mxu1 %v2389_v46  ;;  %2276 = vmatprep.mubr.msk.bf16.mxu1 %vm2477_vm0, %v2476_v0  ;;  %v2443_v28 = vpop.eup %2442  ;;  %v739_v29 = vpack.c.bf16 %v2441_v24, %v2441_v24  ;;  %v1053_v46 = vadd.f32 %v1973_v33, %v1046_v38  ;;  %v1223_v51 = vadd.f32 %v2012_v41, %v1216_v44  ;;  %v2424_v33 = vld [vmem:[%s2536_s27 + $0x190] sm:$0xff]   ;;  %v2094_v38 = vld [vmem:[%s2557_s8 + $0xb8] sm:$0xff] }
  0x34   : > { %2262 = vmatprep.subr.bf16.mxu1 %v2476_v0  ;;  %v909_v36 = vpack.c.bf16 %v2443_v28, %v2443_v28  ;;  %v2091_v28 = vld [vmem:[%s2557_s8 + $0xb0] sm:$0xff]  ;;  %v2426_v41 = vld [vmem:[%s2536_s27 + $0x198] sm:$0xff]  }
  0x35   : > { %2243 = vmatpush3.bf16.msra.mxu0 %v2390_v55  ;;  %v1065_v54 = vadd.f32 %v1064_v47, %v1053_v46  ;;  %v1076_v55 = vmul.f32 %v1979_v49, %v1977_v43  ;;  %v1235_v59 = vadd.f32 %v1234_v52, %v1223_v51  ;;  %v1586_v43 = vmul.f32 %v2096_v39, %v2094_v38  ;;  %v2428_v46 = vld [vmem:[%s2536_s27 + $0x1a0] sm:$0xff]   ;;  %v2430_v49 = vld [vmem:[%s2536_s27 + $0x1a8] sm:$0xff]   ;;  %v2432_v51 = vld [vmem:[%s2536_s27 + $0x1b0] sm:$0xff]  }
  0x36   : > { %2244 = vmatprep.subr.bf16.mxu0 %v2476_v0  ;;  %v2433_v52 = vld [vmem:[%s2536_s27 + $0x1f0] sm:$0xff]  }
  0x37   : > { %2263 = vmatpush3.bf16.msra.mxu1 %v2391_v58  ;;  %v2410_v58 = vld [vmem:[%s2536_s27 + $0x118] sm:$0xff]   ;;  %v1077_v61 = vadd.f32 %v1076_v55, %v1065_v54  ;;  %v1247_v1 = vadd.f32 %v1246_v60, %v1235_v59  ;;  %v1842_v59 = vld [vmem:[%s2754_s17] ss:$0 sm:$0xff] }
  0x38   : > { %2264 = vmatprep.subr.bf16.mxu1 %v2476_v0  ;;  %v2434_v54 = vld [vmem:[%s2536_s27 + $0x1b8] sm:$0xff]  }
  0x39   : > { %2245 = vmatpush3.bf16.msra.mxu0 %v2392_v4  ;;  %2444 = vtanh.f32 %v1077_v61  ;;  %v2415_v4 = vld [vmem:[%s2536_s27 + $0x168] sm:$0xff]  }
  0x3a   : > { %2246 = vmatprep.subr.bf16.mxu0 %v2476_v0  ;;  %2446 = vtanh.f32 %v1247_v1 }
  0x3b   : > { %2265 = vmatpush3.bf16.msra.mxu1 %v2393_v11 }
  0x3c   : > { %2266 = vmatprep.subr.bf16.mxu1 %v2476_v0 }
  0x3d   : > { %2247 = vmatpush3.bf16.msra.mxu0 %v2394_v12  ;;  %v2048_v12 = vld [vmem:[%s2557_s8 + $0x90] sm:$0xff] }
  0x3e   : > { %2248 = vmatprep.subr.bf16.mxu0 %v2476_v0 }
  0x3f   : > { %2267 = vmatpush3.bf16.msra.mxu1 %v2395_v16  ;;  %v2421_v16 = vld [vmem:[%s2536_s27 + $0x1c0] sm:$0xff]  }
  0x40   : > { %2268 = vmatprep.subr.bf16.mxu1 %v2476_v0 }
  0x41   : > { %2249 = vmatpush3.bf16.msra.mxu0 %v2396_v17  ;;  %v1386_v17 = vmul.f32 %v2050_v13, %v2048_v12 }
  0x42   : > { %2250 = vmatprep.subr.bf16.mxu0 %v2476_v0 }
  0x43   : > { %2269 = vmatpush3.bf16.msra.mxu1 %v2397_v19  ;;  %v2445_v7 = vpop.eup %2444  ;;  %v2089_v19 = vld [vmem:[%s2562_s11 + $0x15] ss:$0 sm:$0xff] }
  0x44   : > { %2270 = vmatprep.subr.bf16.mxu1 %v2476_v0  ;;  %v2447_v9 = vpop.eup %2446  ;;  %v1079_v11 = vpack.c.bf16 %v2445_v7, %v2445_v7  ;;  %v1556_v24 = vmul.f32 %v2089_v19, %v2087_v18  ;;  %v1851_v7 = vld [vmem:[%s2762_s20] ss:$0 sm:$0xff] }
  0x45   : > { %2251 = vmatpush3.bf16.msra.mxu0 %v2398_v20  ;;  %v1249_v15 = vpack.c.bf16 %v2447_v9, %v2447_v9  ;;  %v2051_v20 = vld [vmem:[%s2568_s14 + $0x6] ss:$0 sm:$0xff] }
  0x46   : > { %2252 = vmatprep.subr.bf16.mxu0 %v2476_v0  ;;  %v1563_v34 = vadd.f32 %v2090_v27, %v1556_v24 }
  0x47   : > { %2271 = vmatpush3.bf16.msra.mxu1 %v2399_v21  ;;  %v2052_v21 = vld [vmem:[%s2557_s8 + $0x98] sm:$0xff] }
  0x48   : > { %2272 = vmatprep.subr.bf16.mxu1 %v2476_v0 }
  0x49   : > { %2253 = vmatpush3.bf16.msra.mxu0 %v2400_v22  ;;  %v2054_v22 = vld [vmem:[%s2562_s11 + $0x13] ss:$0 sm:$0xff] }
  0x4a   : > { %2254 = vmatprep.subr.bf16.mxu0 %v2476_v0 }
  0x4b   : > { %2273 = vmatpush3.bf16.msra.mxu1 %v2401_v23  ;;  %v2422_v23 = vld [vmem:[%s2536_s27 + $0x188] sm:$0xff]  }
  0x4c   : > { %2274 = vmatprep.subr.bf16.mxu1 %v2476_v0 }
  0x4d   : > { %2255 = vmatpush3.bf16.msra.mxu0 %v2402_v25  ;;  %v1393_v25 = vadd.f32 %v2051_v20, %v1386_v17  ;;  %v1958_v17 = vld [vmem:[%s2754_s17 + $0x3] ss:$0 sm:$0xff] }
  0x4e   : > { %2280 = vmatprep.subr.bf16.mxu0 %v2476_v0 }
  0x4f   : > { %2275 = vmatpush3.bf16.msra.mxu1 %v2403_v26  ;;  %v1404_v26 = vmul.f32 %v2054_v22, %v2052_v21 }
  0x50   : > { %2257 = vmatmul.mubr.bf16.vlgmr.msra.gmra.mrb[4].mxu0 %v739_v29  ;;  %2300 = vmatprep.subr.bf16.mxu1 %v2476_v0  ;;  %v2093_v29 = vld [vmem:[%s2562_s11 + $0x16] ss:$0 sm:$0xff] }
  0x51   : > { %2281 = vmatpush3.bf16.msra.mxu0 %v2404_v31  ;;  %2296 = vmatprep.mubr.msk.bf16.mxu0 %vm2477_vm0, %v2476_v0  ;;  %v2055_v31 = vld [vmem:[%s2557_s8 + $0xa0] sm:$0xff]  ;;  %v1574_v35 = vmul.f32 %v2093_v29, %v2091_v28 }
  0x52   : > { %2282 = vmatprep.subr.bf16.mxu0 %v2476_v0  ;;  %2277 = vmatmul.mubr.bf16.vlgmr.msra.gmra.mrb[4].mxu1 %v909_v36  ;;  %v1405_v36 = vadd.f32 %v1404_v26, %v1393_v25  ;;  %v1929_v26 = vld [vmem:[%s2762_s20 + $0x2] ss:$0 sm:$0xff]  ;;  %v1968_v29 = vld [vmem:[%s2762_s20 + $0x3] ss:$0 sm:$0xff] }
  0x53   : > { %2301 = vmatpush3.bf16.msra.mxu1 %v2405_v32  ;;  %2316 = vmatprep.mubr.msk.bf16.mxu1 %vm2477_vm0, %v2476_v0  ;;  %v2057_v32 = vld [vmem:[%s2562_s11 + $0x14] ss:$0 sm:$0xff] }
  0x54   : > { %2302 = vmatprep.subr.bf16.mxu1 %v2476_v0 }
  0x55   : > { %2283 = vmatpush3.bf16.msra.mxu0 %v2406_v37  ;;  %v1416_v37 = vmul.f32 %v2057_v32, %v2055_v31 }
  0x56   : > { %2284 = vmatprep.subr.bf16.mxu0 %v2476_v0 }
  0x57   : > { %2303 = vmatpush3.bf16.msra.mxu1 %v2407_v42  ;;  %v1575_v42 = vadd.f32 %v1574_v35, %v1563_v34  ;;  %v1417_v44 = vadd.f32 %v1416_v37, %v1405_v36  ;;  %v1997_v34 = vld [vmem:[%s2754_s17 + $0x4] ss:$0 sm:$0xff]  ;;  %v2036_v37 = vld [vmem:[%s2754_s17 + $0x5] ss:$0 sm:$0xff] }
  0x58   : > { %2304 = vmatprep.subr.bf16.mxu1 %v2476_v0 }
  0x59   : > { %2285 = vmatpush3.bf16.msra.mxu0 %v2408_v50  ;;  %v1587_v47 = vadd.f32 %v1586_v43, %v1575_v42  ;;  %2448 = vtanh.f32 %v1417_v44  ;;  %v2431_v50 = vld [vmem:[%s2536_s27 + $0x1e8] sm:$0xff]  }
  0x5a   : > { %2286 = vmatprep.subr.bf16.mxu0 %v2476_v0 }
  0x5b   : > { %2305 = vmatpush3.bf16.msra.mxu1 %v2409_v57  ;;  %2450 = vtanh.f32 %v1587_v47 }
  0x5c   : > { %2306 = vmatprep.subr.bf16.mxu1 %v2476_v0 }
  0x5d   : > { %2287 = vmatpush3.bf16.msra.mxu0 %v2410_v58 }
  0x5e   : > { %2288 = vmatprep.subr.bf16.mxu0 %v2476_v0 }
  0x5f   : > { %2307 = vmatpush3.bf16.msra.mxu1 %v2411_v62  ;;  %v1880_v62 = vld [vmem:[%s2754_s17 + $0x1] ss:$0 sm:$0xff] }
  0x60   : > { %2308 = vmatprep.subr.bf16.mxu1 %v2476_v0 }
  0x61   : > { %2289 = vmatpush3.bf16.msra.mxu0 %v2412_v63 }
  0x62   : > { %2290 = vmatprep.subr.bf16.mxu0 %v2476_v0 }
  0x63   : > { %2309 = vmatpush3.bf16.msra.mxu1 %v2413_v2  ;;  %v2449_v53 = vpop.eup %2448 }
  0x64   : > { %2310 = vmatprep.subr.bf16.mxu1 %v2476_v0  ;;  %v1419_v57 = vpack.c.bf16 %v2449_v53, %v2449_v53 }
  0x65   : > { %2291 = vmatpush3.bf16.msra.mxu0 %v2414_v3  ;;  %v2451_v55 = vpop.eup %2450 }
  0x66   : > { %2292 = vmatprep.subr.bf16.mxu0 %v2476_v0  ;;  %v1589_v58 = vpack.c.bf16 %v2451_v55, %v2451_v55 }
  0x67   : > { %2311 = vmatpush3.bf16.msra.mxu1 %v2415_v4 }
  0x68   : > { %2312 = vmatprep.subr.bf16.mxu1 %v2476_v0 }
  0x69   : > { %2293 = vmatpush3.bf16.msra.mxu0 %v2416_v5 }
  0x6a   : > { %2294 = vmatprep.subr.bf16.mxu0 %v2476_v0 }
  0x6b   : > { %2313 = vmatpush3.bf16.msra.mxu1 %v2417_v6 }
  0x6c   : > { %2314 = vmatprep.subr.bf16.mxu1 %v2476_v0 }
  0x6d   : > { %2295 = vmatpush3.bf16.msra.mxu0 %v2418_v8 }
  0x6e   : > { %2320 = vmatprep.subr.bf16.mxu0 %v2476_v0 }
  0x6f   : > { %2315 = vmatpush3.bf16.msra.mxu1 %v2419_v10  ;;  %v1890_v10 = vld [vmem:[%s2762_s20 + $0x1] ss:$0 sm:$0xff] }
  0x70   : > { %2297 = vmatmul.mubr.bf16.vlgmr.msra.gmra.mrb[8].mxu0 %v1079_v11  ;;  %2340 = vmatprep.subr.bf16.mxu1 %v2476_v0 }
  0x71   : > { %2321 = vmatpush3.bf16.msra.mxu0 %v2420_v14  ;;  %2336 = vmatprep.mubr.msk.bf16.mxu0 %vm2477_vm0, %v2476_v0  ;;  %v1919_v14 = vld [vmem:[%s2754_s17 + $0x2] ss:$0 sm:$0xff] }
  0x72   : > { %2322 = vmatprep.subr.bf16.mxu0 %v2476_v0  ;;  %2317 = vmatmul.mubr.bf16.vlgmr.msra.gmra.mrb[8].mxu1 %v1249_v15 }
  0x73   : > { %2341 = vmatpush3.bf16.msra.mxu1 %v2421_v16  ;;  %2356 = vmatprep.mubr.msk.bf16.mxu1 %vm2477_vm0, %v2476_v0 }
  0x74   : > { %2342 = vmatprep.subr.bf16.mxu1 %v2476_v0 }
  0x75   : > { %2323 = vmatpush3.bf16.msra.mxu0 %v2422_v23 }
  0x76   : > { %2324 = vmatprep.subr.bf16.mxu0 %v2476_v0 }
  0x77   : > { %2343 = vmatpush3.bf16.msra.mxu1 %v2423_v30 }
  0x78   : > { %2344 = vmatprep.subr.bf16.mxu1 %v2476_v0 }
  0x79   : > { %2325 = vmatpush3.bf16.msra.mxu0 %v2424_v33 }
  0x7a   : > { %2326 = vmatprep.subr.bf16.mxu0 %v2476_v0 }
  0x7b   : > { %2345 = vmatpush3.bf16.msra.mxu1 %v2425_v40 }
  0x7c   : > { %2346 = vmatprep.subr.bf16.mxu1 %v2476_v0 }
  0x7d   : > { %2327 = vmatpush3.bf16.msra.mxu0 %v2426_v41 }
  0x7e   : > { %2328 = vmatprep.subr.bf16.mxu0 %v2476_v0 }
  0x7f   : > { %2347 = vmatpush3.bf16.msra.mxu1 %v2427_v45 }
  0x80   : > { %2348 = vmatprep.subr.bf16.mxu1 %v2476_v0 }
  0x81   : > { %2329 = vmatpush3.bf16.msra.mxu0 %v2428_v46  ;;  %v2007_v46 = vld [vmem:[%s2762_s20 + $0x4] ss:$0 sm:$0xff] }
  0x82   : > { %2330 = vmatprep.subr.bf16.mxu0 %v2476_v0 }
  0x83   : > { %2349 = vmatpush3.bf16.msra.mxu1 %v2429_v48 }
  0x84   : > { %2350 = vmatprep.subr.bf16.mxu1 %v2476_v0 }
  0x85   : > { %2331 = vmatpush3.bf16.msra.mxu0 %v2430_v49  ;;  %v2046_v49 = vld [vmem:[%s2762_s20 + $0x5] ss:$0 sm:$0xff] }
  0x86   : > { %2332 = vmatprep.subr.bf16.mxu0 %v2476_v0 }
  0x87   : > { %2351 = vmatpush3.bf16.msra.mxu1 %v2431_v50 }
  0x88   : > { %2352 = vmatprep.subr.bf16.mxu1 %v2476_v0 }
  0x89   : > { %2333 = vmatpush3.bf16.msra.mxu0 %v2432_v51 }
  0x8a   : > { %2334 = vmatprep.subr.bf16.mxu0 %v2476_v0 }
  0x8b   : > { %2353 = vmatpush3.bf16.msra.mxu1 %v2433_v52 }
  0x8c   : > { %2354 = vmatprep.subr.bf16.mxu1 %v2476_v0 }
  0x8d   : > { %2335 = vmatpush3.bf16.msra.mxu0 %v2434_v54  ;;  %v2075_v54 = vld [vmem:[%s2754_s17 + $0x6] ss:$0 sm:$0xff] }
  0x8f   : > { %2355 = vmatpush3.bf16.msra.mxu1 %v2435_v56 }
  0x90   : > { %2337 = vmatmul.mubr.bf16.vlgmr.msra.gmra.mrb[12].mxu0 %v1419_v57  ;;  %v2114_v57 = vld [vmem:[%s2754_s17 + $0x7] ss:$0 sm:$0xff] }
  0x92   : > { %2357 = vmatmul.mubr.bf16.vlgmr.msra.gmra.mrb[12].mxu1 %v1589_v58 }
 0x103   : > { %v508_v60 = vpop.f32.mrb[0].mxu0 }
 0x104   : > { %v509_v61 = vadd.f32 %v1842_v59, %v508_v60  ;;  %v2218_v63 = vpop.f32.mrb[1].mxu0 }
 0x105   : > { %v511_v1 = vpop.f32.mrb[2].mxu0  ;;  %v677_v0 = vpop.f32.mrb[0].mxu1 }
 0x106   : > { %2452 = vtanh.f32 %v509_v61  ;;  %v2219_v2 = vpop.f32.mrb[3].mxu0  ;;  %v678_v3 = vadd.f32 %v1880_v62, %v677_v0  ;;  %v2238_v4 = vpop.f32.mrb[1].mxu1 }
 0x107   : > { %v680_v5 = vpop.f32.mrb[2].mxu1  ;;  %v2085_v2 = vld [vmem:[%s2762_s20 + $0x6] ss:$0 sm:$0xff] }
 0x108   : > { %2454 = vtanh.f32 %v678_v3  ;;  %v2239_v6 = vpop.f32.mrb[3].mxu1  ;;  %v2124_v5 = vld [vmem:[%s2762_s20 + $0x7] ss:$0 sm:$0xff] }
 0x110   : > { %v2453_v8 = vpop.eup %2452 }
 0x111   : > { %v522_v9 = vmul.f32 %v2453_v8, %v1851_v7 }
 0x112   : > { %v2455_v11 = vpop.eup %2454 }
 0x113   : > { %v692_v12 = vmul.f32 %v2455_v11, %v1890_v10 }
 0x115   : > { %v693_v13 = vadd.f32 %v692_v12, %v522_v9 }
 0x123   : > { %v847_v15 = vpop.f32.mrb[4].mxu0 }
 0x124   : > { %v848_v16 = vadd.f32 %v1919_v14, %v847_v15  ;;  %v2258_v18 = vpop.f32.mrb[5].mxu0 }
 0x125   : > { %v850_v19 = vpop.f32.mrb[6].mxu0  ;;  %v1017_v20 = vpop.f32.mrb[4].mxu1 }
 0x126   : > { %2456 = vtanh.f32 %v848_v16  ;;  %v2259_v21 = vpop.f32.mrb[7].mxu0  ;;  %v1018_v22 = vadd.f32 %v1958_v17, %v1017_v20  ;;  %v2278_v23 = vpop.f32.mrb[5].mxu1 }
 0x127   : > { %v1020_v24 = vpop.f32.mrb[6].mxu1 }
 0x128   : > { %2458 = vtanh.f32 %v1018_v22  ;;  %v2279_v25 = vpop.f32.mrb[7].mxu1 }
 0x130   : > { %v2457_v27 = vpop.eup %2456 }
 0x131   : > { %v862_v28 = vmul.f32 %v2457_v27, %v1929_v26 }
 0x132   : > { %v2459_v30 = vpop.eup %2458 }
 0x133   : > { %v863_v31 = vadd.f32 %v862_v28, %v693_v13  ;;  %v1032_v32 = vmul.f32 %v2459_v30, %v1968_v29 }
 0x135   : > { %v1033_v33 = vadd.f32 %v1032_v32, %v863_v31 }
 0x143   : > { %v1187_v35 = vpop.f32.mrb[8].mxu0 }
 0x144   : > { %v1188_v36 = vadd.f32 %v1997_v34, %v1187_v35  ;;  %v2298_v38 = vpop.f32.mrb[9].mxu0 }
 0x145   : > { %v1190_v39 = vpop.f32.mrb[10].mxu0  ;;  %v1357_v40 = vpop.f32.mrb[8].mxu1 }
 0x146   : > { %2460 = vtanh.f32 %v1188_v36  ;;  %v2299_v41 = vpop.f32.mrb[11].mxu0  ;;  %v1358_v42 = vadd.f32 %v2036_v37, %v1357_v40  ;;  %v2318_v43 = vpop.f32.mrb[9].mxu1 }
 0x147   : > { %v1360_v44 = vpop.f32.mrb[10].mxu1 }
 0x148   : > { %2462 = vtanh.f32 %v1358_v42  ;;  %v2319_v45 = vpop.f32.mrb[11].mxu1 }
 0x150   : > { %v2461_v47 = vpop.eup %2460 }
 0x151   : > { %v1202_v48 = vmul.f32 %v2461_v47, %v2007_v46 }
 0x152   : > { %v2463_v50 = vpop.eup %2462 }
 0x153   : > { %v1203_v51 = vadd.f32 %v1202_v48, %v1033_v33  ;;  %v1372_v52 = vmul.f32 %v2463_v50, %v2046_v49 }
 0x155   : > { %v1373_v53 = vadd.f32 %v1372_v52, %v1203_v51 }
 0x163   : > { %v1527_v55 = vpop.f32.mrb[12].mxu0 }
 0x164   : > { %v1528_v56 = vadd.f32 %v2075_v54, %v1527_v55  ;;  %v2338_v58 = vpop.f32.mrb[13].mxu0 }
 0x165   : > { %v1530_v59 = vpop.f32.mrb[14].mxu0  ;;  %v1697_v60 = vpop.f32.mrb[12].mxu1 }
 0x166   : > { %2464 = vtanh.f32 %v1528_v56  ;;  %v2339_v61 = vpop.f32.mrb[15].mxu0  ;;  %v1698_v62 = vadd.f32 %v2114_v57, %v1697_v60  ;;  %v2358_v63 = vpop.f32.mrb[13].mxu1 }
 0x167   : > { %v1700_v1 = vpop.f32.mrb[14].mxu1 }
 0x168   : > { %2466 = vtanh.f32 %v1698_v62  ;;  %v2359_v0 = vpop.f32.mrb[15].mxu1 }
 0x170   : > { %v2465_v3 = vpop.eup %2464 }
 0x171   : > { %v1542_v4 = vmul.f32 %v2465_v3, %v2085_v2 }
 0x172   : > { %v2467_v6 = vpop.eup %2466 }
 0x173   : > { %v1543_v7 = vadd.f32 %v1542_v4, %v1373_v53  ;;  %v1712_v8 = vmul.f32 %v2467_v6, %v2124_v5 }
 0x175   : > { %v1713_v9 = vadd.f32 %v1712_v8, %v1543_v7 }
 0x177   : > { %1714 = vst [vmem:[%s358_s26] sm:$0xff] %v1713_v9 }
 0x178 PF: > { %s16_s21 = sadd.s32 1, %s2474_s21  }
 0x179   : > { %p13_p5 = scmp.ge.s32.totalorder %s16_s21, 6  }
 0x17b   :  { %15 = sbr.rel (!%p13_p5) target bundleno = 1 (0x1), region = 163 }

</bundles_post_ra>
